<compile_context>
chip_gen: v5e
topology: v5e:2x2
jax: 0.10.0
libtpu: 0.0.40
codegen_flags: <defaults>
</compile_context>

<pallas_src>
import functools

import jax
import jax.numpy as jnp
from jax.experimental import pallas as pl
from jax.experimental.pallas import tpu as pltpu

LN_EPS = 1e-5  # torch.nn.LayerNorm default


def _layernorm(x, w, b):
    mu = jnp.mean(x, axis=-1, keepdims=True)
    var = jnp.mean((x - mu) ** 2, axis=-1, keepdims=True)
    return (x - mu) * jax.lax.rsqrt(var + LN_EPS) * w + b


# ---------------------------------------------------------------------------
# Fused kernel: one grid step == one batch element, all layers inside.
# ---------------------------------------------------------------------------
def _fused_mapper_kernel(num_layers, num_heads, clip_length,
                         x_ref, lwT_ref, lb_ref, pc_ref,
                         ln1w_ref, ln1b_ref,
                         wqT_ref, wkvT_ref, wph_ref, bp_ref,
                         ln2w_ref, ln2b_ref,
                         fc1T_ref, fc1b_ref, fc2T_ref, fc2b_ref,
                         o_ref):
    prefix_length, c = pc_ref.shape
    d = c // num_heads
    scale = d ** -0.5

    # ---- initial nn.Linear(dim_clip, clip_length*C): x @ W^T + b (W^T packed) --
    xb = x_ref[0]                                                    # (1, dim_clip)
    mapped = jnp.dot(xb.astype(lwT_ref.dtype), lwT_ref[...],
                     preferred_element_type=jnp.float32) + lb_ref[...]   # (1, clip*C)

    # .view(clip_length, C) + cat([x, prefix_const]) -> seq (N, C)
    rows = [mapped[:, t * c:(t + 1) * c] for t in range(clip_length)]
    seq = jnp.concatenate(rows + [pc_ref[...]], axis=0)              # (N, C)

    # ---- all TransformerLayers fused (pre-LN MHA + pre-LN MLP, residuals) -----
    for l in range(num_layers):
        # multi-head self-attention on LN1(seq)
        xn = _layernorm(seq, ln1w_ref[l], ln1b_ref[l])
        wq = wqT_ref[l]                                              # (C, C)
        wkv = wkvT_ref[l]                                            # (C, 2C)
        q = jnp.dot(xn.astype(wq.dtype), wq, preferred_element_type=jnp.float32)
        kv = jnp.dot(xn.astype(wkv.dtype), wkv, preferred_element_type=jnp.float32)
        k = kv[:, :c]     # torch reshape (m, 2, H, D): first C cols are keys
        v = kv[:, c:]     # last C cols are values (head-major within each)

        # heads batched on the leading axis -> single batched attention
        qh = jnp.stack([q[:, h * d:(h + 1) * d] for h in range(num_heads)], axis=0)
        kh = jnp.stack([k[:, h * d:(h + 1) * d] for h in range(num_heads)], axis=0)
        vh = jnp.stack([v[:, h * d:(h + 1) * d] for h in range(num_heads)], axis=0)
        s = jnp.einsum('hnd,hmd->hnm', qh, kh,
                       preferred_element_type=jnp.float32) * scale   # (H, N, N)
        s = s - jnp.max(s, axis=-1, keepdims=True)
        e = jnp.exp(s)
        att = e * pl.reciprocal(jnp.sum(e, axis=-1, keepdims=True), approx=True)
        oh = jnp.einsum('hnm,hmd->hnd', att, vh,
                        preferred_element_type=jnp.float32)          # (H, N, D)

        # output projection with per-head weights (H, D, C), reduced over heads
        wph = wph_ref[l]
        proj = jnp.einsum('hnd,hdc->hnc', oh.astype(wph.dtype), wph,
                          preferred_element_type=jnp.float32)
        proj = jnp.sum(proj, axis=0) + bp_ref[l]
        x1 = seq + proj

        # MLP on LN2(x1); dropout p=0.0 -> identity
        xn2 = _layernorm(x1, ln2w_ref[l], ln2b_ref[l])
        w1 = fc1T_ref[l]
        w2 = fc2T_ref[l]
        h1 = jnp.dot(xn2.astype(w1.dtype), w1,
                     preferred_element_type=jnp.float32) + fc1b_ref[l]
        h1 = jnp.maximum(h1, 0.0)
        h2 = jnp.dot(h1.astype(w2.dtype), w2,
                     preferred_element_type=jnp.float32) + fc2b_ref[l]
        seq = x1 + h2

    # ---- lane-dense output: prefix rows flattened to one (1, P*C) store -------
    out_rows = [seq[clip_length + p:clip_length + p + 1, :]
                for p in range(prefix_length)]
    o_ref[0] = jnp.concatenate(out_rows, axis=1)                     # (1, P*C)


# ---------------------------------------------------------------------------
# Wrapper-side layout plumbing (done once, free) + pallas_call
# ---------------------------------------------------------------------------
def pack_params(params, num_heads, weight_dtype=jnp.float32):
    P, C = params["prefix_const"].shape
    D = C // num_heads
    layers = params["layers"]

    def stack(key, f=lambda a: a):
        return jnp.stack([f(lyr[key]) for lyr in layers], axis=0)

    wcast = lambda a: a.astype(weight_dtype)
    return dict(
        linear_wT=wcast(params["linear_w"].T),                            # (Din, clip*C)
        linear_b=params["linear_b"].reshape(1, -1).astype(jnp.float32),
        prefix_const=params["prefix_const"].astype(jnp.float32),          # (P, C)
        ln1_w=stack("ln1_w"), ln1_b=stack("ln1_b"),                       # (L,1,C)
        wqT=wcast(stack("wq", lambda w: w.T)),                            # (L,C,C)
        wkvT=wcast(stack("wkv", lambda w: w.T)),                          # (L,C,2C)
        wp_h=wcast(stack("wp", lambda w: w.T.reshape(num_heads, D, C))),  # (L,H,D,C)
        bp=stack("bp"),                                                   # (L,1,C)
        ln2_w=stack("ln2_w"), ln2_b=stack("ln2_b"),
        fc1T=wcast(stack("fc1_w", lambda w: w.T)),                        # (L,C,Hm)
        fc1_b=stack("fc1_b"),                                             # (L,1,Hm)
        fc2T=wcast(stack("fc2_w", lambda w: w.T)),                        # (L,Hm,C)
        fc2_b=stack("fc2_b"),                                             # (L,1,C)
    )


def transformer_mapper_forward(x, params, clip_length, num_heads=8,
                               weight_dtype=jnp.float32):
    B, dim_clip = x.shape
    P, C = params["prefix_const"].shape
    L = len(params["layers"])
    pk = pack_params(params, num_heads, weight_dtype)

    x3 = x.reshape(B, 1, dim_clip)  # keep the blocked dims equal to full dims

    operands = (x3, pk["linear_wT"], pk["linear_b"], pk["prefix_const"],
                pk["ln1_w"], pk["ln1_b"],
                pk["wqT"], pk["wkvT"], pk["wp_h"], pk["bp"],
                pk["ln2_w"], pk["ln2_b"],
                pk["fc1T"], pk["fc1_b"], pk["fc2T"], pk["fc2_b"])

    def replicated(a):
        return pl.BlockSpec(a.shape, lambda b, _n=a.ndim: (0,) * _n)

    in_specs = ([pl.BlockSpec((1, 1, dim_clip), lambda b: (b, 0, 0))]
                + [replicated(a) for a in operands[1:]])

    kern = functools.partial(_fused_mapper_kernel, L, num_heads, clip_length)
    out = pl.pallas_call(
        kern,
        out_shape=jax.ShapeDtypeStruct((B, 1, P * C), jnp.float32),
        grid=(B,),
        in_specs=in_specs,
        out_specs=pl.BlockSpec((1, 1, P * C), lambda b: (b, 0, 0)),
        compiler_params=pltpu.CompilerParams(
            dimension_semantics=("parallel",)),   # v7x: batch sharded over both TCs
    )(*operands)
    return out.reshape(B, P, C)


# ---------------------------------------------------------------------------
# Deterministic parameter construction (synthetic; PyTorch layouts)
# ---------------------------------------------------------------------------
def init_params(key, dim_clip, dim_embedding, prefix_length, clip_length,
                num_layers, mlp_ratio=2.0):
    C = dim_embedding
    H = int(C * mlp_ratio)
    keys = jax.random.split(key, 2 + num_layers)

    def lin(k, out_d, in_d):
        return (jax.random.normal(k, (out_d, in_d), jnp.float32)
                * (1.0 / jnp.sqrt(in_d)))

    params = {
        "linear_w": lin(keys[0], clip_length * C, dim_clip),
        "linear_b": jnp.zeros((clip_length * C,), jnp.float32),
        "prefix_const": jax.random.normal(keys[1], (prefix_length, C), jnp.float32),
        "layers": [],
    }
    for i in range(num_layers):
        lk = jax.random.split(keys[2 + i], 8)
        params["layers"].append(dict(
            ln1_w=jnp.ones((1, C), jnp.float32),
            ln1_b=jnp.zeros((1, C), jnp.float32),
            wq=lin(lk[0], C, C),
            wkv=lin(lk[1], 2 * C, C),
            wp=lin(lk[2], C, C),
            bp=0.01 * jax.random.normal(lk[3], (1, C), jnp.float32),
            ln2_w=jnp.ones((1, C), jnp.float32),
            ln2_b=jnp.zeros((1, C), jnp.float32),
            fc1_w=lin(lk[4], H, C),
            fc1_b=0.01 * jax.random.normal(lk[5], (1, H), jnp.float32),
            fc2_w=lin(lk[6], C, H),
            fc2_b=0.01 * jax.random.normal(lk[7], (1, C), jnp.float32),
        ))
    return params


if __name__ == "__main__":
    # Small shapes consistent with TransformerMapper:
    #   dim_clip=16, dim_embedding=32 (divisible by num_heads=8),
    #   clip_length=4, prefix_length=4, num_layers=2, batch=2.
    B, DIM_CLIP, DIM_EMB = 2, 16, 32
    CLIP_LEN, PREFIX_LEN, NUM_LAYERS, NUM_HEADS = 4, 4, 2, 8

    key = jax.random.PRNGKey(0)
    k_x, k_p = jax.random.split(key)
    x = jax.random.normal(k_x, (B, DIM_CLIP), jnp.float32)
    params = init_params(k_p, DIM_CLIP, DIM_EMB, PREFIX_LEN, CLIP_LEN, NUM_LAYERS)

    # f32 everywhere for the demo; pass weight_dtype=jnp.bfloat16 on v6e to use the
    # bf16 MXU path (elementwise LN/softmax math stays f32 for v5e compatibility).
    out = transformer_mapper_forward(x, params, CLIP_LEN, NUM_HEADS)
    out = jax.block_until_ready(out)
    assert out.shape == (B, PREFIX_LEN, DIM_EMB), out.shape
    assert jnp.all(jnp.isfinite(out))
    print("KERNEL_OK")
</pallas_src>

<mosaic_0001>
module attributes {stable_mosaic.version = 11 : i64} {
  func.func @_fused_mapper_kernel(%arg0: i32, %arg1: memref<1x1x16xf32, #tpu.memory_space<vmem>>, %arg2: memref<16x128xf32, #tpu.memory_space<vmem>>, %arg3: memref<1x128xf32, #tpu.memory_space<vmem>>, %arg4: memref<4x32xf32, #tpu.memory_space<vmem>>, %arg5: memref<2x1x32xf32, #tpu.memory_space<vmem>>, %arg6: memref<2x1x32xf32, #tpu.memory_space<vmem>>, %arg7: memref<2x32x32xf32, #tpu.memory_space<vmem>>, %arg8: memref<2x32x64xf32, #tpu.memory_space<vmem>>, %arg9: memref<2x8x4x32xf32, #tpu.memory_space<vmem>>, %arg10: memref<2x1x32xf32, #tpu.memory_space<vmem>>, %arg11: memref<2x1x32xf32, #tpu.memory_space<vmem>>, %arg12: memref<2x1x32xf32, #tpu.memory_space<vmem>>, %arg13: memref<2x32x64xf32, #tpu.memory_space<vmem>>, %arg14: memref<2x1x64xf32, #tpu.memory_space<vmem>>, %arg15: memref<2x64x32xf32, #tpu.memory_space<vmem>>, %arg16: memref<2x1x32xf32, #tpu.memory_space<vmem>>, %arg17: memref<1x1x128xf32, #tpu.memory_space<vmem>>) attributes {dimension_semantics = [#tpu.dimension_semantics<parallel>], iteration_bounds = array<i64: 2>, scalar_prefetch = 0 : i64, scratch_operands = 0 : i64, tpu.core_type = #tpu.core_type<tc>, window_params = [{transform_indices = @transform_0, window_bounds = array<i64: 1, 1, 16>}, {pipeline_mode = #tpu.pipeline_mode<synchronous>, transform_indices = @transform_1, window_bounds = array<i64: 16, 128>}, {pipeline_mode = #tpu.pipeline_mode<synchronous>, transform_indices = @transform_2, window_bounds = array<i64: 1, 128>}, {pipeline_mode = #tpu.pipeline_mode<synchronous>, transform_indices = @transform_3, window_bounds = array<i64: 4, 32>}, {pipeline_mode = #tpu.pipeline_mode<synchronous>, transform_indices = @transform_4, window_bounds = array<i64: 2, 1, 32>}, {pipeline_mode = #tpu.pipeline_mode<synchronous>, transform_indices = @transform_5, window_bounds = array<i64: 2, 1, 32>}, {pipeline_mode = #tpu.pipeline_mode<synchronous>, transform_indices = @transform_6, window_bounds = array<i64: 2, 32, 32>}, {pipeline_mode = #tpu.pipeline_mode<synchronous>, transform_indices = @transform_7, window_bounds = array<i64: 2, 32, 64>}, {pipeline_mode = #tpu.pipeline_mode<synchronous>, transform_indices = @transform_8, window_bounds = array<i64: 2, 8, 4, 32>}, {pipeline_mode = #tpu.pipeline_mode<synchronous>, transform_indices = @transform_9, window_bounds = array<i64: 2, 1, 32>}, {pipeline_mode = #tpu.pipeline_mode<synchronous>, transform_indices = @transform_10, window_bounds = array<i64: 2, 1, 32>}, {pipeline_mode = #tpu.pipeline_mode<synchronous>, transform_indices = @transform_11, window_bounds = array<i64: 2, 1, 32>}, {pipeline_mode = #tpu.pipeline_mode<synchronous>, transform_indices = @transform_12, window_bounds = array<i64: 2, 32, 64>}, {pipeline_mode = #tpu.pipeline_mode<synchronous>, transform_indices = @transform_13, window_bounds = array<i64: 2, 1, 64>}, {pipeline_mode = #tpu.pipeline_mode<synchronous>, transform_indices = @transform_14, window_bounds = array<i64: 2, 64, 32>}, {pipeline_mode = #tpu.pipeline_mode<synchronous>, transform_indices = @transform_15, window_bounds = array<i64: 2, 1, 32>}, {transform_indices = @transform_16, window_bounds = array<i64: 1, 1, 128>}]} {
    %c0 = arith.constant 0 : index
    %c0_0 = arith.constant 0 : index
    %c0_1 = arith.constant 0 : index
    %0 = vector.load %arg1[%c0, %c0_0, %c0_1] : memref<1x1x16xf32, #tpu.memory_space<vmem>>, vector<1x1x16xf32>
    %1 = vector.shape_cast %0 : vector<1x1x16xf32> to vector<1x16xf32>
    %c0_2 = arith.constant 0 : index
    %c0_3 = arith.constant 0 : index
    %2 = vector.load %arg2[%c0_2, %c0_3] : memref<16x128xf32, #tpu.memory_space<vmem>>, vector<16x128xf32>
    %cst = arith.constant dense<0.000000e+00> : vector<1x128xf32>
    %3 = tpu.matmul %1, %2, %cst {dimension_numbers = #tpu.dot_dimension_numbers<[1], [0], [0], [1], [0, 0, 1, 1], [], []>} : vector<1x16xf32>, vector<16x128xf32>, vector<1x128xf32> -> vector<1x128xf32>
    %c0_4 = arith.constant 0 : index
    %c0_5 = arith.constant 0 : index
    %4 = vector.load %arg3[%c0_4, %c0_5] : memref<1x128xf32, #tpu.memory_space<vmem>>, vector<1x128xf32>
    %5 = arith.addf %3, %4 : vector<1x128xf32>
    %6 = vector.extract_strided_slice %5 {offsets = [0, 0], sizes = [1, 32], strides = [1, 1]} : vector<1x128xf32> to vector<1x32xf32>
    %7 = vector.extract_strided_slice %5 {offsets = [0, 32], sizes = [1, 32], strides = [1, 1]} : vector<1x128xf32> to vector<1x32xf32>
    %8 = vector.extract_strided_slice %5 {offsets = [0, 64], sizes = [1, 32], strides = [1, 1]} : vector<1x128xf32> to vector<1x32xf32>
    %9 = vector.extract_strided_slice %5 {offsets = [0, 96], sizes = [1, 32], strides = [1, 1]} : vector<1x128xf32> to vector<1x32xf32>
    %c0_6 = arith.constant 0 : index
    %c0_7 = arith.constant 0 : index
    %10 = vector.load %arg4[%c0_6, %c0_7] : memref<4x32xf32, #tpu.memory_space<vmem>>, vector<4x32xf32>
    %11 = tpu.concatenate %6, %7, %8, %9, %10 in 0 : vector<1x32xf32>, vector<1x32xf32>, vector<1x32xf32>, vector<1x32xf32>, vector<4x32xf32> -> vector<8x32xf32>
    %c0_8 = arith.constant 0 : index
    %c0_9 = arith.constant 0 : index
    %c0_10 = arith.constant 0 : index
    %12 = vector.load %arg5[%c0_8, %c0_9, %c0_10] : memref<2x1x32xf32, #tpu.memory_space<vmem>>, vector<1x1x32xf32>
    %13 = vector.shape_cast %12 : vector<1x1x32xf32> to vector<1x32xf32>
    %c0_11 = arith.constant 0 : index
    %c0_12 = arith.constant 0 : index
    %c0_13 = arith.constant 0 : index
    %14 = vector.load %arg6[%c0_11, %c0_12, %c0_13] : memref<2x1x32xf32, #tpu.memory_space<vmem>>, vector<1x1x32xf32>
    %15 = vector.shape_cast %14 : vector<1x1x32xf32> to vector<1x32xf32>
    %cst_14 = arith.constant dense<0.000000e+00> : vector<8xf32>
    %16 = vector.multi_reduction <add>, %11, %cst_14 [1] : vector<8x32xf32> to vector<8xf32>
    %17 = vector.shape_cast %16 : vector<8xf32> to vector<8x1xf32>
    %cst_15 = arith.constant 3.200000e+01 : f32
    %18 = vector.broadcast %cst_15 : f32 to vector<8x1xf32>
    %19 = arith.divf %17, %18 : vector<8x1xf32>
    %20 = vector.broadcast %19 : vector<8x1xf32> to vector<8x32xf32>
    %21 = arith.subf %11, %20 : vector<8x32xf32>
    %22 = arith.mulf %21, %21 : vector<8x32xf32>
    %cst_16 = arith.constant dense<0.000000e+00> : vector<8xf32>
    %23 = vector.multi_reduction <add>, %22, %cst_16 [1] : vector<8x32xf32> to vector<8xf32>
    %24 = vector.shape_cast %23 : vector<8xf32> to vector<8x1xf32>
    %cst_17 = arith.constant 3.200000e+01 : f32
    %25 = vector.broadcast %cst_17 : f32 to vector<8x1xf32>
    %26 = arith.divf %24, %25 : vector<8x1xf32>
    %27 = vector.broadcast %19 : vector<8x1xf32> to vector<8x32xf32>
    %28 = arith.subf %11, %27 : vector<8x32xf32>
    %cst_18 = arith.constant 9.99999974E-6 : f32
    %29 = vector.broadcast %cst_18 : f32 to vector<8x1xf32>
    %30 = arith.addf %26, %29 : vector<8x1xf32>
    %31 = math.rsqrt %30 : vector<8x1xf32>
    %32 = vector.broadcast %31 : vector<8x1xf32> to vector<8x32xf32>
    %33 = arith.mulf %28, %32 : vector<8x32xf32>
    %34 = vector.broadcast %13 : vector<1x32xf32> to vector<8x32xf32>
    %35 = arith.mulf %33, %34 : vector<8x32xf32>
    %36 = vector.broadcast %15 : vector<1x32xf32> to vector<8x32xf32>
    %37 = arith.addf %35, %36 : vector<8x32xf32>
    %c0_19 = arith.constant 0 : index
    %c0_20 = arith.constant 0 : index
    %c0_21 = arith.constant 0 : index
    %38 = vector.load %arg7[%c0_19, %c0_20, %c0_21] : memref<2x32x32xf32, #tpu.memory_space<vmem>>, vector<1x32x32xf32>
    %39 = vector.shape_cast %38 : vector<1x32x32xf32> to vector<32x32xf32>
    %c0_22 = arith.constant 0 : index
    %c0_23 = arith.constant 0 : index
    %c0_24 = arith.constant 0 : index
    %40 = vector.load %arg8[%c0_22, %c0_23, %c0_24] : memref<2x32x64xf32, #tpu.memory_space<vmem>>, vector<1x32x64xf32>
    %41 = vector.shape_cast %40 : vector<1x32x64xf32> to vector<32x64xf32>
    %cst_25 = arith.constant dense<0.000000e+00> : vector<8x32xf32>
    %42 = tpu.matmul %37, %39, %cst_25 {dimension_numbers = #tpu.dot_dimension_numbers<[1], [0], [0], [1], [0, 0, 1, 1], [], []>} : vector<8x32xf32>, vector<32x32xf32>, vector<8x32xf32> -> vector<8x32xf32>
    %cst_26 = arith.constant dense<0.000000e+00> : vector<8x64xf32>
    %43 = tpu.matmul %37, %41, %cst_26 {dimension_numbers = #tpu.dot_dimension_numbers<[1], [0], [0], [1], [0, 0, 1, 1], [], []>} : vector<8x32xf32>, vector<32x64xf32>, vector<8x64xf32> -> vector<8x64xf32>
    %44 = vector.extract_strided_slice %43 {offsets = [0, 0], sizes = [8, 32], strides = [1, 1]} : vector<8x64xf32> to vector<8x32xf32>
    %45 = vector.extract_strided_slice %43 {offsets = [0, 32], sizes = [8, 32], strides = [1, 1]} : vector<8x64xf32> to vector<8x32xf32>
    %46 = vector.extract_strided_slice %42 {offsets = [0, 0], sizes = [8, 4], strides = [1, 1]} : vector<8x32xf32> to vector<8x4xf32>
    %47 = vector.extract_strided_slice %42 {offsets = [0, 4], sizes = [8, 4], strides = [1, 1]} : vector<8x32xf32> to vector<8x4xf32>
    %48 = vector.extract_strided_slice %42 {offsets = [0, 8], sizes = [8, 4], strides = [1, 1]} : vector<8x32xf32> to vector<8x4xf32>
    %49 = vector.extract_strided_slice %42 {offsets = [0, 12], sizes = [8, 4], strides = [1, 1]} : vector<8x32xf32> to vector<8x4xf32>
    %50 = vector.extract_strided_slice %42 {offsets = [0, 16], sizes = [8, 4], strides = [1, 1]} : vector<8x32xf32> to vector<8x4xf32>
    %51 = vector.extract_strided_slice %42 {offsets = [0, 20], sizes = [8, 4], strides = [1, 1]} : vector<8x32xf32> to vector<8x4xf32>
    %52 = vector.extract_strided_slice %42 {offsets = [0, 24], sizes = [8, 4], strides = [1, 1]} : vector<8x32xf32> to vector<8x4xf32>
    %53 = vector.extract_strided_slice %42 {offsets = [0, 28], sizes = [8, 4], strides = [1, 1]} : vector<8x32xf32> to vector<8x4xf32>
    %54 = vector.shape_cast %46 : vector<8x4xf32> to vector<1x8x4xf32>
    %55 = vector.shape_cast %47 : vector<8x4xf32> to vector<1x8x4xf32>
    %56 = vector.shape_cast %48 : vector<8x4xf32> to vector<1x8x4xf32>
    %57 = vector.shape_cast %49 : vector<8x4xf32> to vector<1x8x4xf32>
    %58 = vector.shape_cast %50 : vector<8x4xf32> to vector<1x8x4xf32>
    %59 = vector.shape_cast %51 : vector<8x4xf32> to vector<1x8x4xf32>
    %60 = vector.shape_cast %52 : vector<8x4xf32> to vector<1x8x4xf32>
    %61 = vector.shape_cast %53 : vector<8x4xf32> to vector<1x8x4xf32>
    %62 = tpu.concatenate %54, %55, %56, %57, %58, %59, %60, %61 in 0 : vector<1x8x4xf32>, vector<1x8x4xf32>, vector<1x8x4xf32>, vector<1x8x4xf32>, vector<1x8x4xf32>, vector<1x8x4xf32>, vector<1x8x4xf32>, vector<1x8x4xf32> -> vector<8x8x4xf32>
    %63 = vector.extract_strided_slice %44 {offsets = [0, 0], sizes = [8, 4], strides = [1, 1]} : vector<8x32xf32> to vector<8x4xf32>
    %64 = vector.extract_strided_slice %44 {offsets = [0, 4], sizes = [8, 4], strides = [1, 1]} : vector<8x32xf32> to vector<8x4xf32>
    %65 = vector.extract_strided_slice %44 {offsets = [0, 8], sizes = [8, 4], strides = [1, 1]} : vector<8x32xf32> to vector<8x4xf32>
    %66 = vector.extract_strided_slice %44 {offsets = [0, 12], sizes = [8, 4], strides = [1, 1]} : vector<8x32xf32> to vector<8x4xf32>
    %67 = vector.extract_strided_slice %44 {offsets = [0, 16], sizes = [8, 4], strides = [1, 1]} : vector<8x32xf32> to vector<8x4xf32>
    %68 = vector.extract_strided_slice %44 {offsets = [0, 20], sizes = [8, 4], strides = [1, 1]} : vector<8x32xf32> to vector<8x4xf32>
    %69 = vector.extract_strided_slice %44 {offsets = [0, 24], sizes = [8, 4], strides = [1, 1]} : vector<8x32xf32> to vector<8x4xf32>
    %70 = vector.extract_strided_slice %44 {offsets = [0, 28], sizes = [8, 4], strides = [1, 1]} : vector<8x32xf32> to vector<8x4xf32>
    %71 = vector.shape_cast %63 : vector<8x4xf32> to vector<1x8x4xf32>
    %72 = vector.shape_cast %64 : vector<8x4xf32> to vector<1x8x4xf32>
    %73 = vector.shape_cast %65 : vector<8x4xf32> to vector<1x8x4xf32>
    %74 = vector.shape_cast %66 : vector<8x4xf32> to vector<1x8x4xf32>
    %75 = vector.shape_cast %67 : vector<8x4xf32> to vector<1x8x4xf32>
    %76 = vector.shape_cast %68 : vector<8x4xf32> to vector<1x8x4xf32>
    %77 = vector.shape_cast %69 : vector<8x4xf32> to vector<1x8x4xf32>
    %78 = vector.shape_cast %70 : vector<8x4xf32> to vector<1x8x4xf32>
    %79 = tpu.concatenate %71, %72, %73, %74, %75, %76, %77, %78 in 0 : vector<1x8x4xf32>, vector<1x8x4xf32>, vector<1x8x4xf32>, vector<1x8x4xf32>, vector<1x8x4xf32>, vector<1x8x4xf32>, vector<1x8x4xf32>, vector<1x8x4xf32> -> vector<8x8x4xf32>
    %80 = vector.extract_strided_slice %45 {offsets = [0, 0], sizes = [8, 4], strides = [1, 1]} : vector<8x32xf32> to vector<8x4xf32>
    %81 = vector.extract_strided_slice %45 {offsets = [0, 4], sizes = [8, 4], strides = [1, 1]} : vector<8x32xf32> to vector<8x4xf32>
    %82 = vector.extract_strided_slice %45 {offsets = [0, 8], sizes = [8, 4], strides = [1, 1]} : vector<8x32xf32> to vector<8x4xf32>
    %83 = vector.extract_strided_slice %45 {offsets = [0, 12], sizes = [8, 4], strides = [1, 1]} : vector<8x32xf32> to vector<8x4xf32>
    %84 = vector.extract_strided_slice %45 {offsets = [0, 16], sizes = [8, 4], strides = [1, 1]} : vector<8x32xf32> to vector<8x4xf32>
    %85 = vector.extract_strided_slice %45 {offsets = [0, 20], sizes = [8, 4], strides = [1, 1]} : vector<8x32xf32> to vector<8x4xf32>
    %86 = vector.extract_strided_slice %45 {offsets = [0, 24], sizes = [8, 4], strides = [1, 1]} : vector<8x32xf32> to vector<8x4xf32>
    %87 = vector.extract_strided_slice %45 {offsets = [0, 28], sizes = [8, 4], strides = [1, 1]} : vector<8x32xf32> to vector<8x4xf32>
    %88 = vector.shape_cast %80 : vector<8x4xf32> to vector<1x8x4xf32>
    %89 = vector.shape_cast %81 : vector<8x4xf32> to vector<1x8x4xf32>
    %90 = vector.shape_cast %82 : vector<8x4xf32> to vector<1x8x4xf32>
    %91 = vector.shape_cast %83 : vector<8x4xf32> to vector<1x8x4xf32>
    %92 = vector.shape_cast %84 : vector<8x4xf32> to vector<1x8x4xf32>
    %93 = vector.shape_cast %85 : vector<8x4xf32> to vector<1x8x4xf32>
    %94 = vector.shape_cast %86 : vector<8x4xf32> to vector<1x8x4xf32>
    %95 = vector.shape_cast %87 : vector<8x4xf32> to vector<1x8x4xf32>
    %96 = tpu.concatenate %88, %89, %90, %91, %92, %93, %94, %95 in 0 : vector<1x8x4xf32>, vector<1x8x4xf32>, vector<1x8x4xf32>, vector<1x8x4xf32>, vector<1x8x4xf32>, vector<1x8x4xf32>, vector<1x8x4xf32>, vector<1x8x4xf32> -> vector<8x8x4xf32>
    "tpu.trace_start"() <{level = 10 : i32, message = "hnd,hmd->hnm"}> : () -> ()
    %cst_27 = arith.constant dense<0.000000e+00> : vector<8x8x8xf32>
    %97 = tpu.matmul %62, %79, %cst_27 {dimension_numbers = #tpu.dot_dimension_numbers<[2], [2], [1], [1], [0, 0, 0, 1, 1, 1], [0], [0]>} : vector<8x8x4xf32>, vector<8x8x4xf32>, vector<8x8x8xf32> -> vector<8x8x8xf32>
    "tpu.trace_stop"() : () -> ()
    %cst_28 = arith.constant 5.000000e-01 : f32
    %98 = vector.broadcast %cst_28 : f32 to vector<8x8x8xf32>
    %99 = arith.mulf %97, %98 : vector<8x8x8xf32>
    %cst_29 = arith.constant dense<0xFF800000> : vector<8x8xf32>
    %100 = vector.multi_reduction <maximumf>, %99, %cst_29 [2] : vector<8x8x8xf32> to vector<8x8xf32>
    %101 = vector.shape_cast %100 : vector<8x8xf32> to vector<8x8x1xf32>
    %102 = vector.broadcast %101 : vector<8x8x1xf32> to vector<8x8x8xf32>
    %103 = arith.subf %99, %102 : vector<8x8x8xf32>
    %104 = math.exp %103 : vector<8x8x8xf32>
    %cst_30 = arith.constant dense<0.000000e+00> : vector<8x8xf32>
    %105 = vector.multi_reduction <add>, %104, %cst_30 [2] : vector<8x8x8xf32> to vector<8x8xf32>
    %106 = vector.shape_cast %105 : vector<8x8xf32> to vector<8x8x1xf32>
    %107 = tpu.reciprocal %106 {approx = true} : vector<8x8x1xf32> -> vector<8x8x1xf32>
    %108 = vector.broadcast %107 : vector<8x8x1xf32> to vector<8x8x8xf32>
    %109 = arith.mulf %104, %108 : vector<8x8x8xf32>
    "tpu.trace_start"() <{level = 10 : i32, message = "hnm,hmd->hnd"}> : () -> ()
    %cst_31 = arith.constant dense<0.000000e+00> : vector<8x8x4xf32>
    %110 = tpu.matmul %109, %96, %cst_31 {dimension_numbers = #tpu.dot_dimension_numbers<[2], [1], [1], [2], [0, 0, 0, 1, 1, 2], [0], [0]>} : vector<8x8x8xf32>, vector<8x8x4xf32>, vector<8x8x4xf32> -> vector<8x8x4xf32>
    "tpu.trace_stop"() : () -> ()
    %c0_32 = arith.constant 0 : index
    %c0_33 = arith.constant 0 : index
    %c0_34 = arith.constant 0 : index
    %c0_35 = arith.constant 0 : index
    %111 = vector.load %arg9[%c0_32, %c0_33, %c0_34, %c0_35] : memref<2x8x4x32xf32, #tpu.memory_space<vmem>>, vector<1x8x4x32xf32>
    %112 = vector.shape_cast %111 : vector<1x8x4x32xf32> to vector<8x4x32xf32>
    "tpu.trace_start"() <{level = 10 : i32, message = "hnd,hdc->hnc"}> : () -> ()
    %cst_36 = arith.constant dense<0.000000e+00> : vector<8x8x32xf32>
    %113 = tpu.matmul %110, %112, %cst_36 {dimension_numbers = #tpu.dot_dimension_numbers<[2], [1], [1], [2], [0, 0, 0, 1, 1, 2], [0], [0]>} : vector<8x8x4xf32>, vector<8x4x32xf32>, vector<8x8x32xf32> -> vector<8x8x32xf32>
    "tpu.trace_stop"() : () -> ()
    %cst_37 = arith.constant dense<0.000000e+00> : vector<8x32xf32>
    %114 = vector.multi_reduction <add>, %113, %cst_37 [0] : vector<8x8x32xf32> to vector<8x32xf32>
    %c0_38 = arith.constant 0 : index
    %c0_39 = arith.constant 0 : index
    %c0_40 = arith.constant 0 : index
    %115 = vector.load %arg10[%c0_38, %c0_39, %c0_40] : memref<2x1x32xf32, #tpu.memory_space<vmem>>, vector<1x1x32xf32>
    %116 = vector.shape_cast %115 : vector<1x1x32xf32> to vector<1x32xf32>
    %117 = vector.broadcast %116 : vector<1x32xf32> to vector<8x32xf32>
    %118 = arith.addf %114, %117 : vector<8x32xf32>
    %119 = arith.addf %11, %118 : vector<8x32xf32>
    %c0_41 = arith.constant 0 : index
    %c0_42 = arith.constant 0 : index
    %c0_43 = arith.constant 0 : index
    %120 = vector.load %arg11[%c0_41, %c0_42, %c0_43] : memref<2x1x32xf32, #tpu.memory_space<vmem>>, vector<1x1x32xf32>
    %121 = vector.shape_cast %120 : vector<1x1x32xf32> to vector<1x32xf32>
    %c0_44 = arith.constant 0 : index
    %c0_45 = arith.constant 0 : index
    %c0_46 = arith.constant 0 : index
    %122 = vector.load %arg12[%c0_44, %c0_45, %c0_46] : memref<2x1x32xf32, #tpu.memory_space<vmem>>, vector<1x1x32xf32>
    %123 = vector.shape_cast %122 : vector<1x1x32xf32> to vector<1x32xf32>
    %cst_47 = arith.constant dense<0.000000e+00> : vector<8xf32>
    %124 = vector.multi_reduction <add>, %119, %cst_47 [1] : vector<8x32xf32> to vector<8xf32>
    %125 = vector.shape_cast %124 : vector<8xf32> to vector<8x1xf32>
    %cst_48 = arith.constant 3.200000e+01 : f32
    %126 = vector.broadcast %cst_48 : f32 to vector<8x1xf32>
    %127 = arith.divf %125, %126 : vector<8x1xf32>
    %128 = vector.broadcast %127 : vector<8x1xf32> to vector<8x32xf32>
    %129 = arith.subf %119, %128 : vector<8x32xf32>
    %130 = arith.mulf %129, %129 : vector<8x32xf32>
    %cst_49 = arith.constant dense<0.000000e+00> : vector<8xf32>
    %131 = vector.multi_reduction <add>, %130, %cst_49 [1] : vector<8x32xf32> to vector<8xf32>
    %132 = vector.shape_cast %131 : vector<8xf32> to vector<8x1xf32>
    %cst_50 = arith.constant 3.200000e+01 : f32
    %133 = vector.broadcast %cst_50 : f32 to vector<8x1xf32>
    %134 = arith.divf %132, %133 : vector<8x1xf32>
    %135 = vector.broadcast %127 : vector<8x1xf32> to vector<8x32xf32>
    %136 = arith.subf %119, %135 : vector<8x32xf32>
    %cst_51 = arith.constant 9.99999974E-6 : f32
    %137 = vector.broadcast %cst_51 : f32 to vector<8x1xf32>
    %138 = arith.addf %134, %137 : vector<8x1xf32>
    %139 = math.rsqrt %138 : vector<8x1xf32>
    %140 = vector.broadcast %139 : vector<8x1xf32> to vector<8x32xf32>
    %141 = arith.mulf %136, %140 : vector<8x32xf32>
    %142 = vector.broadcast %121 : vector<1x32xf32> to vector<8x32xf32>
    %143 = arith.mulf %141, %142 : vector<8x32xf32>
    %144 = vector.broadcast %123 : vector<1x32xf32> to vector<8x32xf32>
    %145 = arith.addf %143, %144 : vector<8x32xf32>
    %c0_52 = arith.constant 0 : index
    %c0_53 = arith.constant 0 : index
    %c0_54 = arith.constant 0 : index
    %146 = vector.load %arg13[%c0_52, %c0_53, %c0_54] : memref<2x32x64xf32, #tpu.memory_space<vmem>>, vector<1x32x64xf32>
    %147 = vector.shape_cast %146 : vector<1x32x64xf32> to vector<32x64xf32>
    %c0_55 = arith.constant 0 : index
    %c0_56 = arith.constant 0 : index
    %c0_57 = arith.constant 0 : index
    %148 = vector.load %arg15[%c0_55, %c0_56, %c0_57] : memref<2x64x32xf32, #tpu.memory_space<vmem>>, vector<1x64x32xf32>
    %149 = vector.shape_cast %148 : vector<1x64x32xf32> to vector<64x32xf32>
    %cst_58 = arith.constant dense<0.000000e+00> : vector<8x64xf32>
    %150 = tpu.matmul %145, %147, %cst_58 {dimension_numbers = #tpu.dot_dimension_numbers<[1], [0], [0], [1], [0, 0, 1, 1], [], []>} : vector<8x32xf32>, vector<32x64xf32>, vector<8x64xf32> -> vector<8x64xf32>
    %c0_59 = arith.constant 0 : index
    %c0_60 = arith.constant 0 : index
    %c0_61 = arith.constant 0 : index
    %151 = vector.load %arg14[%c0_59, %c0_60, %c0_61] : memref<2x1x64xf32, #tpu.memory_space<vmem>>, vector<1x1x64xf32>
    %152 = vector.shape_cast %151 : vector<1x1x64xf32> to vector<1x64xf32>
    %153 = vector.broadcast %152 : vector<1x64xf32> to vector<8x64xf32>
    %154 = arith.addf %150, %153 : vector<8x64xf32>
    %cst_62 = arith.constant 0.000000e+00 : f32
    %155 = vector.broadcast %cst_62 : f32 to vector<8x64xf32>
    %156 = arith.maximumf %154, %155 : vector<8x64xf32>
    %cst_63 = arith.constant dense<0.000000e+00> : vector<8x32xf32>
    %157 = tpu.matmul %156, %149, %cst_63 {dimension_numbers = #tpu.dot_dimension_numbers<[1], [0], [0], [1], [0, 0, 1, 1], [], []>} : vector<8x64xf32>, vector<64x32xf32>, vector<8x32xf32> -> vector<8x32xf32>
    %c0_64 = arith.constant 0 : index
    %c0_65 = arith.constant 0 : index
    %c0_66 = arith.constant 0 : index
    %158 = vector.load %arg16[%c0_64, %c0_65, %c0_66] : memref<2x1x32xf32, #tpu.memory_space<vmem>>, vector<1x1x32xf32>
    %159 = vector.shape_cast %158 : vector<1x1x32xf32> to vector<1x32xf32>
    %160 = vector.broadcast %159 : vector<1x32xf32> to vector<8x32xf32>
    %161 = arith.addf %157, %160 : vector<8x32xf32>
    %162 = arith.addf %119, %161 : vector<8x32xf32>
    %c1 = arith.constant 1 : index
    %c0_67 = arith.constant 0 : index
    %c0_68 = arith.constant 0 : index
    %163 = vector.load %arg5[%c1, %c0_67, %c0_68] : memref<2x1x32xf32, #tpu.memory_space<vmem>>, vector<1x1x32xf32>
    %164 = vector.shape_cast %163 : vector<1x1x32xf32> to vector<1x32xf32>
    %c1_69 = arith.constant 1 : index
    %c0_70 = arith.constant 0 : index
    %c0_71 = arith.constant 0 : index
    %165 = vector.load %arg6[%c1_69, %c0_70, %c0_71] : memref<2x1x32xf32, #tpu.memory_space<vmem>>, vector<1x1x32xf32>
    %166 = vector.shape_cast %165 : vector<1x1x32xf32> to vector<1x32xf32>
    %cst_72 = arith.constant dense<0.000000e+00> : vector<8xf32>
    %167 = vector.multi_reduction <add>, %162, %cst_72 [1] : vector<8x32xf32> to vector<8xf32>
    %168 = vector.shape_cast %167 : vector<8xf32> to vector<8x1xf32>
    %cst_73 = arith.constant 3.200000e+01 : f32
    %169 = vector.broadcast %cst_73 : f32 to vector<8x1xf32>
    %170 = arith.divf %168, %169 : vector<8x1xf32>
    %171 = vector.broadcast %170 : vector<8x1xf32> to vector<8x32xf32>
    %172 = arith.subf %162, %171 : vector<8x32xf32>
    %173 = arith.mulf %172, %172 : vector<8x32xf32>
    %cst_74 = arith.constant dense<0.000000e+00> : vector<8xf32>
    %174 = vector.multi_reduction <add>, %173, %cst_74 [1] : vector<8x32xf32> to vector<8xf32>
    %175 = vector.shape_cast %174 : vector<8xf32> to vector<8x1xf32>
    %cst_75 = arith.constant 3.200000e+01 : f32
    %176 = vector.broadcast %cst_75 : f32 to vector<8x1xf32>
    %177 = arith.divf %175, %176 : vector<8x1xf32>
    %178 = vector.broadcast %170 : vector<8x1xf32> to vector<8x32xf32>
    %179 = arith.subf %162, %178 : vector<8x32xf32>
    %cst_76 = arith.constant 9.99999974E-6 : f32
    %180 = vector.broadcast %cst_76 : f32 to vector<8x1xf32>
    %181 = arith.addf %177, %180 : vector<8x1xf32>
    %182 = math.rsqrt %181 : vector<8x1xf32>
    %183 = vector.broadcast %182 : vector<8x1xf32> to vector<8x32xf32>
    %184 = arith.mulf %179, %183 : vector<8x32xf32>
    %185 = vector.broadcast %164 : vector<1x32xf32> to vector<8x32xf32>
    %186 = arith.mulf %184, %185 : vector<8x32xf32>
    %187 = vector.broadcast %166 : vector<1x32xf32> to vector<8x32xf32>
    %188 = arith.addf %186, %187 : vector<8x32xf32>
    %c1_77 = arith.constant 1 : index
    %c0_78 = arith.constant 0 : index
    %c0_79 = arith.constant 0 : index
    %189 = vector.load %arg7[%c1_77, %c0_78, %c0_79] : memref<2x32x32xf32, #tpu.memory_space<vmem>>, vector<1x32x32xf32>
    %190 = vector.shape_cast %189 : vector<1x32x32xf32> to vector<32x32xf32>
    %c1_80 = arith.constant 1 : index
    %c0_81 = arith.constant 0 : index
    %c0_82 = arith.constant 0 : index
    %191 = vector.load %arg8[%c1_80, %c0_81, %c0_82] : memref<2x32x64xf32, #tpu.memory_space<vmem>>, vector<1x32x64xf32>
    %192 = vector.shape_cast %191 : vector<1x32x64xf32> to vector<32x64xf32>
    %cst_83 = arith.constant dense<0.000000e+00> : vector<8x32xf32>
    %193 = tpu.matmul %188, %190, %cst_83 {dimension_numbers = #tpu.dot_dimension_numbers<[1], [0], [0], [1], [0, 0, 1, 1], [], []>} : vector<8x32xf32>, vector<32x32xf32>, vector<8x32xf32> -> vector<8x32xf32>
    %cst_84 = arith.constant dense<0.000000e+00> : vector<8x64xf32>
    %194 = tpu.matmul %188, %192, %cst_84 {dimension_numbers = #tpu.dot_dimension_numbers<[1], [0], [0], [1], [0, 0, 1, 1], [], []>} : vector<8x32xf32>, vector<32x64xf32>, vector<8x64xf32> -> vector<8x64xf32>
    %195 = vector.extract_strided_slice %194 {offsets = [0, 0], sizes = [8, 32], strides = [1, 1]} : vector<8x64xf32> to vector<8x32xf32>
    %196 = vector.extract_strided_slice %194 {offsets = [0, 32], sizes = [8, 32], strides = [1, 1]} : vector<8x64xf32> to vector<8x32xf32>
    %197 = vector.extract_strided_slice %193 {offsets = [0, 0], sizes = [8, 4], strides = [1, 1]} : vector<8x32xf32> to vector<8x4xf32>
    %198 = vector.extract_strided_slice %193 {offsets = [0, 4], sizes = [8, 4], strides = [1, 1]} : vector<8x32xf32> to vector<8x4xf32>
    %199 = vector.extract_strided_slice %193 {offsets = [0, 8], sizes = [8, 4], strides = [1, 1]} : vector<8x32xf32> to vector<8x4xf32>
    %200 = vector.extract_strided_slice %193 {offsets = [0, 12], sizes = [8, 4], strides = [1, 1]} : vector<8x32xf32> to vector<8x4xf32>
    %201 = vector.extract_strided_slice %193 {offsets = [0, 16], sizes = [8, 4], strides = [1, 1]} : vector<8x32xf32> to vector<8x4xf32>
    %202 = vector.extract_strided_slice %193 {offsets = [0, 20], sizes = [8, 4], strides = [1, 1]} : vector<8x32xf32> to vector<8x4xf32>
    %203 = vector.extract_strided_slice %193 {offsets = [0, 24], sizes = [8, 4], strides = [1, 1]} : vector<8x32xf32> to vector<8x4xf32>
    %204 = vector.extract_strided_slice %193 {offsets = [0, 28], sizes = [8, 4], strides = [1, 1]} : vector<8x32xf32> to vector<8x4xf32>
    %205 = vector.shape_cast %197 : vector<8x4xf32> to vector<1x8x4xf32>
    %206 = vector.shape_cast %198 : vector<8x4xf32> to vector<1x8x4xf32>
    %207 = vector.shape_cast %199 : vector<8x4xf32> to vector<1x8x4xf32>
    %208 = vector.shape_cast %200 : vector<8x4xf32> to vector<1x8x4xf32>
    %209 = vector.shape_cast %201 : vector<8x4xf32> to vector<1x8x4xf32>
    %210 = vector.shape_cast %202 : vector<8x4xf32> to vector<1x8x4xf32>
    %211 = vector.shape_cast %203 : vector<8x4xf32> to vector<1x8x4xf32>
    %212 = vector.shape_cast %204 : vector<8x4xf32> to vector<1x8x4xf32>
    %213 = tpu.concatenate %205, %206, %207, %208, %209, %210, %211, %212 in 0 : vector<1x8x4xf32>, vector<1x8x4xf32>, vector<1x8x4xf32>, vector<1x8x4xf32>, vector<1x8x4xf32>, vector<1x8x4xf32>, vector<1x8x4xf32>, vector<1x8x4xf32> -> vector<8x8x4xf32>
    %214 = vector.extract_strided_slice %195 {offsets = [0, 0], sizes = [8, 4], strides = [1, 1]} : vector<8x32xf32> to vector<8x4xf32>
    %215 = vector.extract_strided_slice %195 {offsets = [0, 4], sizes = [8, 4], strides = [1, 1]} : vector<8x32xf32> to vector<8x4xf32>
    %216 = vector.extract_strided_slice %195 {offsets = [0, 8], sizes = [8, 4], strides = [1, 1]} : vector<8x32xf32> to vector<8x4xf32>
    %217 = vector.extract_strided_slice %195 {offsets = [0, 12], sizes = [8, 4], strides = [1, 1]} : vector<8x32xf32> to vector<8x4xf32>
    %218 = vector.extract_strided_slice %195 {offsets = [0, 16], sizes = [8, 4], strides = [1, 1]} : vector<8x32xf32> to vector<8x4xf32>
    %219 = vector.extract_strided_slice %195 {offsets = [0, 20], sizes = [8, 4], strides = [1, 1]} : vector<8x32xf32> to vector<8x4xf32>
    %220 = vector.extract_strided_slice %195 {offsets = [0, 24], sizes = [8, 4], strides = [1, 1]} : vector<8x32xf32> to vector<8x4xf32>
    %221 = vector.extract_strided_slice %195 {offsets = [0, 28], sizes = [8, 4], strides = [1, 1]} : vector<8x32xf32> to vector<8x4xf32>
    %222 = vector.shape_cast %214 : vector<8x4xf32> to vector<1x8x4xf32>
    %223 = vector.shape_cast %215 : vector<8x4xf32> to vector<1x8x4xf32>
    %224 = vector.shape_cast %216 : vector<8x4xf32> to vector<1x8x4xf32>
    %225 = vector.shape_cast %217 : vector<8x4xf32> to vector<1x8x4xf32>
    %226 = vector.shape_cast %218 : vector<8x4xf32> to vector<1x8x4xf32>
    %227 = vector.shape_cast %219 : vector<8x4xf32> to vector<1x8x4xf32>
    %228 = vector.shape_cast %220 : vector<8x4xf32> to vector<1x8x4xf32>
    %229 = vector.shape_cast %221 : vector<8x4xf32> to vector<1x8x4xf32>
    %230 = tpu.concatenate %222, %223, %224, %225, %226, %227, %228, %229 in 0 : vector<1x8x4xf32>, vector<1x8x4xf32>, vector<1x8x4xf32>, vector<1x8x4xf32>, vector<1x8x4xf32>, vector<1x8x4xf32>, vector<1x8x4xf32>, vector<1x8x4xf32> -> vector<8x8x4xf32>
    %231 = vector.extract_strided_slice %196 {offsets = [0, 0], sizes = [8, 4], strides = [1, 1]} : vector<8x32xf32> to vector<8x4xf32>
    %232 = vector.extract_strided_slice %196 {offsets = [0, 4], sizes = [8, 4], strides = [1, 1]} : vector<8x32xf32> to vector<8x4xf32>
    %233 = vector.extract_strided_slice %196 {offsets = [0, 8], sizes = [8, 4], strides = [1, 1]} : vector<8x32xf32> to vector<8x4xf32>
    %234 = vector.extract_strided_slice %196 {offsets = [0, 12], sizes = [8, 4], strides = [1, 1]} : vector<8x32xf32> to vector<8x4xf32>
    %235 = vector.extract_strided_slice %196 {offsets = [0, 16], sizes = [8, 4], strides = [1, 1]} : vector<8x32xf32> to vector<8x4xf32>
    %236 = vector.extract_strided_slice %196 {offsets = [0, 20], sizes = [8, 4], strides = [1, 1]} : vector<8x32xf32> to vector<8x4xf32>
    %237 = vector.extract_strided_slice %196 {offsets = [0, 24], sizes = [8, 4], strides = [1, 1]} : vector<8x32xf32> to vector<8x4xf32>
    %238 = vector.extract_strided_slice %196 {offsets = [0, 28], sizes = [8, 4], strides = [1, 1]} : vector<8x32xf32> to vector<8x4xf32>
    %239 = vector.shape_cast %231 : vector<8x4xf32> to vector<1x8x4xf32>
    %240 = vector.shape_cast %232 : vector<8x4xf32> to vector<1x8x4xf32>
    %241 = vector.shape_cast %233 : vector<8x4xf32> to vector<1x8x4xf32>
    %242 = vector.shape_cast %234 : vector<8x4xf32> to vector<1x8x4xf32>
    %243 = vector.shape_cast %235 : vector<8x4xf32> to vector<1x8x4xf32>
    %244 = vector.shape_cast %236 : vector<8x4xf32> to vector<1x8x4xf32>
    %245 = vector.shape_cast %237 : vector<8x4xf32> to vector<1x8x4xf32>
    %246 = vector.shape_cast %238 : vector<8x4xf32> to vector<1x8x4xf32>
    %247 = tpu.concatenate %239, %240, %241, %242, %243, %244, %245, %246 in 0 : vector<1x8x4xf32>, vector<1x8x4xf32>, vector<1x8x4xf32>, vector<1x8x4xf32>, vector<1x8x4xf32>, vector<1x8x4xf32>, vector<1x8x4xf32>, vector<1x8x4xf32> -> vector<8x8x4xf32>
    "tpu.trace_start"() <{level = 10 : i32, message = "hnd,hmd->hnm"}> : () -> ()
    %cst_85 = arith.constant dense<0.000000e+00> : vector<8x8x8xf32>
    %248 = tpu.matmul %213, %230, %cst_85 {dimension_numbers = #tpu.dot_dimension_numbers<[2], [2], [1], [1], [0, 0, 0, 1, 1, 1], [0], [0]>} : vector<8x8x4xf32>, vector<8x8x4xf32>, vector<8x8x8xf32> -> vector<8x8x8xf32>
    "tpu.trace_stop"() : () -> ()
    %cst_86 = arith.constant 5.000000e-01 : f32
    %249 = vector.broadcast %cst_86 : f32 to vector<8x8x8xf32>
    %250 = arith.mulf %248, %249 : vector<8x8x8xf32>
    %cst_87 = arith.constant dense<0xFF800000> : vector<8x8xf32>
    %251 = vector.multi_reduction <maximumf>, %250, %cst_87 [2] : vector<8x8x8xf32> to vector<8x8xf32>
    %252 = vector.shape_cast %251 : vector<8x8xf32> to vector<8x8x1xf32>
    %253 = vector.broadcast %252 : vector<8x8x1xf32> to vector<8x8x8xf32>
    %254 = arith.subf %250, %253 : vector<8x8x8xf32>
    %255 = math.exp %254 : vector<8x8x8xf32>
    %cst_88 = arith.constant dense<0.000000e+00> : vector<8x8xf32>
    %256 = vector.multi_reduction <add>, %255, %cst_88 [2] : vector<8x8x8xf32> to vector<8x8xf32>
    %257 = vector.shape_cast %256 : vector<8x8xf32> to vector<8x8x1xf32>
    %258 = tpu.reciprocal %257 {approx = true} : vector<8x8x1xf32> -> vector<8x8x1xf32>
    %259 = vector.broadcast %258 : vector<8x8x1xf32> to vector<8x8x8xf32>
    %260 = arith.mulf %255, %259 : vector<8x8x8xf32>
    "tpu.trace_start"() <{level = 10 : i32, message = "hnm,hmd->hnd"}> : () -> ()
    %cst_89 = arith.constant dense<0.000000e+00> : vector<8x8x4xf32>
    %261 = tpu.matmul %260, %247, %cst_89 {dimension_numbers = #tpu.dot_dimension_numbers<[2], [1], [1], [2], [0, 0, 0, 1, 1, 2], [0], [0]>} : vector<8x8x8xf32>, vector<8x8x4xf32>, vector<8x8x4xf32> -> vector<8x8x4xf32>
    "tpu.trace_stop"() : () -> ()
    %c1_90 = arith.constant 1 : index
    %c0_91 = arith.constant 0 : index
    %c0_92 = arith.constant 0 : index
    %c0_93 = arith.constant 0 : index
    %262 = vector.load %arg9[%c1_90, %c0_91, %c0_92, %c0_93] : memref<2x8x4x32xf32, #tpu.memory_space<vmem>>, vector<1x8x4x32xf32>
    %263 = vector.shape_cast %262 : vector<1x8x4x32xf32> to vector<8x4x32xf32>
    "tpu.trace_start"() <{level = 10 : i32, message = "hnd,hdc->hnc"}> : () -> ()
    %cst_94 = arith.constant dense<0.000000e+00> : vector<8x8x32xf32>
    %264 = tpu.matmul %261, %263, %cst_94 {dimension_numbers = #tpu.dot_dimension_numbers<[2], [1], [1], [2], [0, 0, 0, 1, 1, 2], [0], [0]>} : vector<8x8x4xf32>, vector<8x4x32xf32>, vector<8x8x32xf32> -> vector<8x8x32xf32>
    "tpu.trace_stop"() : () -> ()
    %cst_95 = arith.constant dense<0.000000e+00> : vector<8x32xf32>
    %265 = vector.multi_reduction <add>, %264, %cst_95 [0] : vector<8x8x32xf32> to vector<8x32xf32>
    %c1_96 = arith.constant 1 : index
    %c0_97 = arith.constant 0 : index
    %c0_98 = arith.constant 0 : index
    %266 = vector.load %arg10[%c1_96, %c0_97, %c0_98] : memref<2x1x32xf32, #tpu.memory_space<vmem>>, vector<1x1x32xf32>
    %267 = vector.shape_cast %266 : vector<1x1x32xf32> to vector<1x32xf32>
    %268 = vector.broadcast %267 : vector<1x32xf32> to vector<8x32xf32>
    %269 = arith.addf %265, %268 : vector<8x32xf32>
    %270 = arith.addf %162, %269 : vector<8x32xf32>
    %c1_99 = arith.constant 1 : index
    %c0_100 = arith.constant 0 : index
    %c0_101 = arith.constant 0 : index
    %271 = vector.load %arg11[%c1_99, %c0_100, %c0_101] : memref<2x1x32xf32, #tpu.memory_space<vmem>>, vector<1x1x32xf32>
    %272 = vector.shape_cast %271 : vector<1x1x32xf32> to vector<1x32xf32>
    %c1_102 = arith.constant 1 : index
    %c0_103 = arith.constant 0 : index
    %c0_104 = arith.constant 0 : index
    %273 = vector.load %arg12[%c1_102, %c0_103, %c0_104] : memref<2x1x32xf32, #tpu.memory_space<vmem>>, vector<1x1x32xf32>
    %274 = vector.shape_cast %273 : vector<1x1x32xf32> to vector<1x32xf32>
    %cst_105 = arith.constant dense<0.000000e+00> : vector<8xf32>
    %275 = vector.multi_reduction <add>, %270, %cst_105 [1] : vector<8x32xf32> to vector<8xf32>
    %276 = vector.shape_cast %275 : vector<8xf32> to vector<8x1xf32>
    %cst_106 = arith.constant 3.200000e+01 : f32
    %277 = vector.broadcast %cst_106 : f32 to vector<8x1xf32>
    %278 = arith.divf %276, %277 : vector<8x1xf32>
    %279 = vector.broadcast %278 : vector<8x1xf32> to vector<8x32xf32>
    %280 = arith.subf %270, %279 : vector<8x32xf32>
    %281 = arith.mulf %280, %280 : vector<8x32xf32>
    %cst_107 = arith.constant dense<0.000000e+00> : vector<8xf32>
    %282 = vector.multi_reduction <add>, %281, %cst_107 [1] : vector<8x32xf32> to vector<8xf32>
    %283 = vector.shape_cast %282 : vector<8xf32> to vector<8x1xf32>
    %cst_108 = arith.constant 3.200000e+01 : f32
    %284 = vector.broadcast %cst_108 : f32 to vector<8x1xf32>
    %285 = arith.divf %283, %284 : vector<8x1xf32>
    %286 = vector.broadcast %278 : vector<8x1xf32> to vector<8x32xf32>
    %287 = arith.subf %270, %286 : vector<8x32xf32>
    %cst_109 = arith.constant 9.99999974E-6 : f32
    %288 = vector.broadcast %cst_109 : f32 to vector<8x1xf32>
    %289 = arith.addf %285, %288 : vector<8x1xf32>
    %290 = math.rsqrt %289 : vector<8x1xf32>
    %291 = vector.broadcast %290 : vector<8x1xf32> to vector<8x32xf32>
    %292 = arith.mulf %287, %291 : vector<8x32xf32>
    %293 = vector.broadcast %272 : vector<1x32xf32> to vector<8x32xf32>
    %294 = arith.mulf %292, %293 : vector<8x32xf32>
    %295 = vector.broadcast %274 : vector<1x32xf32> to vector<8x32xf32>
    %296 = arith.addf %294, %295 : vector<8x32xf32>
    %c1_110 = arith.constant 1 : index
    %c0_111 = arith.constant 0 : index
    %c0_112 = arith.constant 0 : index
    %297 = vector.load %arg13[%c1_110, %c0_111, %c0_112] : memref<2x32x64xf32, #tpu.memory_space<vmem>>, vector<1x32x64xf32>
    %298 = vector.shape_cast %297 : vector<1x32x64xf32> to vector<32x64xf32>
    %c1_113 = arith.constant 1 : index
    %c0_114 = arith.constant 0 : index
    %c0_115 = arith.constant 0 : index
    %299 = vector.load %arg15[%c1_113, %c0_114, %c0_115] : memref<2x64x32xf32, #tpu.memory_space<vmem>>, vector<1x64x32xf32>
    %300 = vector.shape_cast %299 : vector<1x64x32xf32> to vector<64x32xf32>
    %cst_116 = arith.constant dense<0.000000e+00> : vector<8x64xf32>
    %301 = tpu.matmul %296, %298, %cst_116 {dimension_numbers = #tpu.dot_dimension_numbers<[1], [0], [0], [1], [0, 0, 1, 1], [], []>} : vector<8x32xf32>, vector<32x64xf32>, vector<8x64xf32> -> vector<8x64xf32>
    %c1_117 = arith.constant 1 : index
    %c0_118 = arith.constant 0 : index
    %c0_119 = arith.constant 0 : index
    %302 = vector.load %arg14[%c1_117, %c0_118, %c0_119] : memref<2x1x64xf32, #tpu.memory_space<vmem>>, vector<1x1x64xf32>
    %303 = vector.shape_cast %302 : vector<1x1x64xf32> to vector<1x64xf32>
    %304 = vector.broadcast %303 : vector<1x64xf32> to vector<8x64xf32>
    %305 = arith.addf %301, %304 : vector<8x64xf32>
    %cst_120 = arith.constant 0.000000e+00 : f32
    %306 = vector.broadcast %cst_120 : f32 to vector<8x64xf32>
    %307 = arith.maximumf %305, %306 : vector<8x64xf32>
    %cst_121 = arith.constant dense<0.000000e+00> : vector<8x32xf32>
    %308 = tpu.matmul %307, %300, %cst_121 {dimension_numbers = #tpu.dot_dimension_numbers<[1], [0], [0], [1], [0, 0, 1, 1], [], []>} : vector<8x64xf32>, vector<64x32xf32>, vector<8x32xf32> -> vector<8x32xf32>
    %c1_122 = arith.constant 1 : index
    %c0_123 = arith.constant 0 : index
    %c0_124 = arith.constant 0 : index
    %309 = vector.load %arg16[%c1_122, %c0_123, %c0_124] : memref<2x1x32xf32, #tpu.memory_space<vmem>>, vector<1x1x32xf32>
    %310 = vector.shape_cast %309 : vector<1x1x32xf32> to vector<1x32xf32>
    %311 = vector.broadcast %310 : vector<1x32xf32> to vector<8x32xf32>
    %312 = arith.addf %308, %311 : vector<8x32xf32>
    %313 = arith.addf %270, %312 : vector<8x32xf32>
    %314 = vector.extract_strided_slice %313 {offsets = [4, 0], sizes = [1, 32], strides = [1, 1]} : vector<8x32xf32> to vector<1x32xf32>
    %315 = vector.extract_strided_slice %313 {offsets = [5, 0], sizes = [1, 32], strides = [1, 1]} : vector<8x32xf32> to vector<1x32xf32>
    %316 = vector.extract_strided_slice %313 {offsets = [6, 0], sizes = [1, 32], strides = [1, 1]} : vector<8x32xf32> to vector<1x32xf32>
    %317 = vector.extract_strided_slice %313 {offsets = [7, 0], sizes = [1, 32], strides = [1, 1]} : vector<8x32xf32> to vector<1x32xf32>
    %318 = tpu.concatenate %314, %315, %316, %317 in 1 : vector<1x32xf32>, vector<1x32xf32>, vector<1x32xf32>, vector<1x32xf32> -> vector<1x128xf32>
    %c0_125 = arith.constant 0 : index
    %c0_126 = arith.constant 0 : index
    %c0_127 = arith.constant 0 : index
    %319 = vector.load %arg17[%c0_125, %c0_126, %c0_127] : memref<1x1x128xf32, #tpu.memory_space<vmem>>, vector<1x1x128xf32>
    %320 = vector.shape_cast %319 : vector<1x1x128xf32> to vector<1x128xf32>
    %321 = vector.shape_cast %318 : vector<1x128xf32> to vector<1x1x128xf32>
    tpu.vector_store %arg17[%c0_125, %c0_126, %c0_127], %321 {strides = array<i32>} : memref<1x1x128xf32, #tpu.memory_space<vmem>>, vector<1x1x128xf32>,
    return
  }
  func.func @transform_0(%arg0: i32) -> (i32, i32, i32) {
    %c0_i32 = arith.constant 0 : i32
    %c0_i32_0 = arith.constant 0 : i32
    %c0_i32_1 = arith.constant 0 : i32
    return %arg0, %c0_i32, %c0_i32_0 : i32, i32, i32
  }
  func.func @transform_1(%arg0: i32) -> (i32, i32) {
    %c0_i32 = arith.constant 0 : i32
    %c0_i32_0 = arith.constant 0 : i32
    %c0_i32_1 = arith.constant 0 : i32
    return %c0_i32, %c0_i32_0 : i32, i32
  }
  func.func @transform_2(%arg0: i32) -> (i32, i32) {
    %c0_i32 = arith.constant 0 : i32
    %c0_i32_0 = arith.constant 0 : i32
    %c0_i32_1 = arith.constant 0 : i32
    return %c0_i32, %c0_i32_0 : i32, i32
  }
  func.func @transform_3(%arg0: i32) -> (i32, i32) {
    %c0_i32 = arith.constant 0 : i32
    %c0_i32_0 = arith.constant 0 : i32
    %c0_i32_1 = arith.constant 0 : i32
    return %c0_i32, %c0_i32_0 : i32, i32
  }
  func.func @transform_4(%arg0: i32) -> (i32, i32, i32) {
    %c0_i32 = arith.constant 0 : i32
    %c0_i32_0 = arith.constant 0 : i32
    %c0_i32_1 = arith.constant 0 : i32
    %c0_i32_2 = arith.constant 0 : i32
    return %c0_i32, %c0_i32_0, %c0_i32_1 : i32, i32, i32
  }
  func.func @transform_5(%arg0: i32) -> (i32, i32, i32) {
    %c0_i32 = arith.constant 0 : i32
    %c0_i32_0 = arith.constant 0 : i32
    %c0_i32_1 = arith.constant 0 : i32
    %c0_i32_2 = arith.constant 0 : i32
    return %c0_i32, %c0_i32_0, %c0_i32_1 : i32, i32, i32
  }
  func.func @transform_6(%arg0: i32) -> (i32, i32, i32) {
    %c0_i32 = arith.constant 0 : i32
    %c0_i32_0 = arith.constant 0 : i32
    %c0_i32_1 = arith.constant 0 : i32
    %c0_i32_2 = arith.constant 0 : i32
    return %c0_i32, %c0_i32_0, %c0_i32_1 : i32, i32, i32
  }
  func.func @transform_7(%arg0: i32) -> (i32, i32, i32) {
    %c0_i32 = arith.constant 0 : i32
    %c0_i32_0 = arith.constant 0 : i32
    %c0_i32_1 = arith.constant 0 : i32
    %c0_i32_2 = arith.constant 0 : i32
    return %c0_i32, %c0_i32_0, %c0_i32_1 : i32, i32, i32
  }
  func.func @transform_8(%arg0: i32) -> (i32, i32, i32, i32) {
    %c0_i32 = arith.constant 0 : i32
    %c0_i32_0 = arith.constant 0 : i32
    %c0_i32_1 = arith.constant 0 : i32
    %c0_i32_2 = arith.constant 0 : i32
    %c0_i32_3 = arith.constant 0 : i32
    return %c0_i32, %c0_i32_0, %c0_i32_1, %c0_i32_2 : i32, i32, i32, i32
  }
  func.func @transform_9(%arg0: i32) -> (i32, i32, i32) {
    %c0_i32 = arith.constant 0 : i32
    %c0_i32_0 = arith.constant 0 : i32
    %c0_i32_1 = arith.constant 0 : i32
    %c0_i32_2 = arith.constant 0 : i32
    return %c0_i32, %c0_i32_0, %c0_i32_1 : i32, i32, i32
  }
  func.func @transform_10(%arg0: i32) -> (i32, i32, i32) {
    %c0_i32 = arith.constant 0 : i32
    %c0_i32_0 = arith.constant 0 : i32
    %c0_i32_1 = arith.constant 0 : i32
    %c0_i32_2 = arith.constant 0 : i32
    return %c0_i32, %c0_i32_0, %c0_i32_1 : i32, i32, i32
  }
  func.func @transform_11(%arg0: i32) -> (i32, i32, i32) {
    %c0_i32 = arith.constant 0 : i32
    %c0_i32_0 = arith.constant 0 : i32
    %c0_i32_1 = arith.constant 0 : i32
    %c0_i32_2 = arith.constant 0 : i32
    return %c0_i32, %c0_i32_0, %c0_i32_1 : i32, i32, i32
  }
  func.func @transform_12(%arg0: i32) -> (i32, i32, i32) {
    %c0_i32 = arith.constant 0 : i32
    %c0_i32_0 = arith.constant 0 : i32
    %c0_i32_1 = arith.constant 0 : i32
    %c0_i32_2 = arith.constant 0 : i32
    return %c0_i32, %c0_i32_0, %c0_i32_1 : i32, i32, i32
  }
  func.func @transform_13(%arg0: i32) -> (i32, i32, i32) {
    %c0_i32 = arith.constant 0 : i32
    %c0_i32_0 = arith.constant 0 : i32
    %c0_i32_1 = arith.constant 0 : i32
    %c0_i32_2 = arith.constant 0 : i32
    return %c0_i32, %c0_i32_0, %c0_i32_1 : i32, i32, i32
  }
  func.func @transform_14(%arg0: i32) -> (i32, i32, i32) {
    %c0_i32 = arith.constant 0 : i32
    %c0_i32_0 = arith.constant 0 : i32
    %c0_i32_1 = arith.constant 0 : i32
    %c0_i32_2 = arith.constant 0 : i32
    return %c0_i32, %c0_i32_0, %c0_i32_1 : i32, i32, i32
  }
  func.func @transform_15(%arg0: i32) -> (i32, i32, i32) {
    %c0_i32 = arith.constant 0 : i32
    %c0_i32_0 = arith.constant 0 : i32
    %c0_i32_1 = arith.constant 0 : i32
    %c0_i32_2 = arith.constant 0 : i32
    return %c0_i32, %c0_i32_0, %c0_i32_1 : i32, i32, i32
  }
  func.func @transform_16(%arg0: i32) -> (i32, i32, i32) {
    %c0_i32 = arith.constant 0 : i32
    %c0_i32_0 = arith.constant 0 : i32
    %c0_i32_1 = arith.constant 0 : i32
    return %arg0, %c0_i32, %c0_i32_0 : i32, i32, i32
  }
}

</mosaic_0001>

<bundles_post_ra>
// kernel: tpu_custom_call.1
= control target key start
LH: loop header
LB: loop body
LE: loop exit
PB: predicated region body
PF: predicated region fallthrough
CT: control target
= control target key end

     0   :  { %s4122_s0 = inlined_call_operand.hbm [shape: f32[2,1,16], index: 0, kind: input, shape index: {}]   ;;  %s4123_s1 = inlined_call_operand.hbm [shape: f32[16,128], index: 1, kind: input, shape index: {}]   ;;  %s4124_s2 = inlined_call_operand.hbm [shape: f32[1,128], index: 2, kind: input, shape index: {}]   ;;  %s4125_s3 = inlined_call_operand.hbm [shape: f32[4,32], index: 3, kind: input, shape index: {}]   ;;  %s4126_s4 = inlined_call_operand.vmem [shape: f32[2,1,32], index: 4, kind: input, shape index: {}]   ;;  %s4127_s5 = inlined_call_operand.hbm [shape: f32[2,1,32], index: 5, kind: input, shape index: {}]   ;;  %s4128_s6 = inlined_call_operand.vmem [shape: f32[2,32,32], index: 6, kind: input, shape index: {}]   ;;  %s4129_s7 = inlined_call_operand.vmem [shape: f32[2,32,64], index: 7, kind: input, shape index: {}]   ;;  %s4130_s8 = inlined_call_operand.vmem [shape: f32[2,8,4,32], index: 8, kind: input, shape index: {}]   ;;  %s4131_s9 = inlined_call_operand.vmem [shape: f32[2,1,32], index: 9, kind: input, shape index: {}]   ;;  %s4132_s10 = inlined_call_operand.vmem [shape: f32[2,1,32], index: 10, kind: input, shape index: {}]   ;;  %s4133_s11 = inlined_call_operand.vmem [shape: f32[2,1,32], index: 11, kind: input, shape index: {}]   ;;  %s4134_s12 = inlined_call_operand.hbm [shape: f32[2,32,64], index: 12, kind: input, shape index: {}]   ;;  %s4135_s13 = inlined_call_operand.vmem [shape: f32[2,1,64], index: 13, kind: input, shape index: {}]   ;;  %s4136_s14 = inlined_call_operand.vmem [shape: f32[2,64,32], index: 14, kind: input, shape index: {}]   ;;  %s4137_s15 = inlined_call_operand.vmem [shape: f32[2,1,32], index: 15, kind: input, shape index: {}]   ;;  %s4138_s16 = inlined_call_operand.hbm [shape: f32[2,1,128], index: 16, kind: output, shape index: {}]  }
   0x1   :  { %4165 = sst [smem:[#allocation19_spill]] %s4122_s0 }
   0x2   :  { %4166 = sst [smem:[#allocation20_spill]] %s4123_s1 }
   0x3   :  { %4167 = sst [smem:[#allocation21_spill]] %s4124_s2 }
   0x4   :  { %4168 = sst [smem:[#allocation22_spill]] %s4125_s3 }
   0x5   :  { %4169 = sst [smem:[#allocation23_spill]] %s4127_s5 }
   0x6   :  { %4170 = sst [smem:[#allocation24_spill]] %s4132_s10 }
   0x7   :  { %4171 = sst [smem:[#allocation25_spill]] %s4133_s11 }
   0x8   :  { %4172 = sst [smem:[#allocation26_spill]] %s4135_s13 }
   0x9   :  { %4173 = sst [smem:[#allocation27_spill]] %s4137_s15 }
   0xa   :  { %4174 = sst [smem:[#allocation28_spill]] %s4138_s16 }
   0xb   :  { %21 = vsyncpa [#allocation3], 0 }
   0xc   :  { %23 = vsyncpa [#allocation3 + $0x1], 0 }
   0xd   :  { %24 = vsyncpa [#allocation6], 0 }
   0xe   :  { %25 = vsyncpa [#allocation9], 0 }
   0xf   :  { %26 = vsyncpa [#allocation12], 0 }
  0x10   :  { %27 = vsyncpa [#allocation4], 0 }
  0x11   :  { %29 = vsyncpa [#allocation4 + $0x1], 0  ;;  %s3452_s21 = smov 0   ;;  %s3454_s22 = smov 0  }
  0x12   :  { %s3456_s23 = smov 0   ;;  %s3458_s24 = smov 0  }
  0x13 LB: > { %s4175_s1 = sld [smem:[#allocation20_spill]]  ;;  %s3476_s28 = sadd.s32 4294967295, %s3345_s24   ;;  %s3345_s24 = sphi %s3458_s24, %s4205_s24   ;;  %s3341_s23 = sphi %s3456_s23, %s4204_s23   ;;  %s3337_s22 = sphi %s3454_s22, %s4203_s22   ;;  %s3333_s21 = sphi %s3452_s21, %s4202_s21  }
  0x14   : > { %p2723_p0 = scmp.ge.s32.totalorder %s3345_s24, 1  ;;  %p56_p1 = scmp.eq.s32.totalorder %s3476_s28, 0 }
  0x15   : > { %p407_p2 = scmp.lt.s32.totalorder %s3345_s24, 3  ;;  %s3347_s30 = smov [#allocation5]  }
  0x16   : > { %s420_s0 = sshll.u32 %s3347_s30, 4  ;;  %s4177_s3 = sld [smem:[#allocation22_spill]]  ;;  %s421_s0 = int_to_ptr.vmem [resolvable:$true] %s420_s0 }
  0x17   : > { %p3481_p3 = pnand %p2723_p0, %p407_p2  ;;  %s4179_s2 = sld [smem:[#allocation21_spill]] }
  0x18   : > { %s3349_s15 = smov 128   ;;  %s3350_s13 = smov 8  }
  0x19   : > { %s418_s27 = sshll.u32 %s4175_s1, 4  ;;  %p2881_p4 = pneg %p3481_p3  ;;  %s419_s27 = int_to_ptr.hbm [resolvable:$true] %s418_s27 }
  0x1a   : > { %s3348_s1 = smov [#allocation8]   ;;  %s4180_s5 = sld [smem:[#allocation23_spill]] }
  0x1b   : > { %p3493_p6 = pnand %p2881_p4, %p56_p1  ;;  %s447_s16 = sshll.u32 %s3348_s1, 4  ;;  %s448_s16 = int_to_ptr.vmem [resolvable:$true] %s447_s16 }
  0x1c   : > { %s445_s19 = sshll.u32 %s4177_s3, 4  ;;  %s3351_s11 = smov [#allocation7]   ;;  %s446_s19 = int_to_ptr.hbm [resolvable:$true] %s445_s19 }
  0x1d   : > { %s433_s30 = sshll.u32 %s4179_s2, 4  ;;  %s435_s10 = sshll.u32 %s3351_s11, 4  ;;  %s434_s30 = int_to_ptr.hbm [resolvable:$true] %s433_s30  ;;  %s436_s10 = int_to_ptr.vmem [resolvable:$true] %s435_s10 }
  0x1e   : > { %2884 = dma.hbm_to_vmem [thread:$0]  (!%p3493_p6), %s419_s27, 256, %s421_s0, [#allocation6], %s3349_s15, %s3349_s15, %s3350_s13  }
  0x1f   : > { %2890 = dma.hbm_to_vmem [thread:$0]  (!%p3493_p6), %s446_s19, 64, %s448_s16, [#allocation9]  }
  0x20   : > { %s459_s3 = sshll.u32 %s4180_s5, 4  ;;  %s3352_s1 = smov [#allocation10]   ;;  %s460_s3 = int_to_ptr.hbm [resolvable:$true] %s459_s3 }
  0x21   : > { %2887 = dma.hbm_to_vmem [thread:$0]  (!%p3493_p6), %s434_s30, 16, %s436_s10, [#allocation6]  }
  0x22   : > { %s461_s27 = sshll.u32 %s3352_s1, 4  ;;  %s3353_s16 = smov 16   ;;  %s462_s27 = int_to_ptr.vmem [resolvable:$true] %s461_s27 }
  0x23   : > { %s3354_s0 = smov 1   ;;  %s491_s25 = sshll.u32 %s4134_s12, 4  ;;  %s492_s25 = int_to_ptr.hbm [resolvable:$true] %s491_s25 }
  0x24   : > { %2893 = dma.hbm_to_vmem [thread:$0]  (!%p3493_p6), %s460_s3, 32, %s462_s27, [#allocation9], %s3353_s16, %s3353_s16, %s3354_s0  }
  0x25   : > { %s3355_s10 = smov [#allocation11]   ;;  %s2722_s30 = sadd.s32 4294967294, %s3345_s24  }
  0x26   : > { %s493_s26 = sshll.u32 %s3355_s10, 4  ;;  %s3518_s17 = sadd.s32 1, %s3345_s24   ;;  %s494_s26 = int_to_ptr.vmem [resolvable:$true] %s493_s26 }
  0x27   : > { %2896 = dma.hbm_to_vmem [thread:$0]  (!%p3493_p6), %s492_s25, 1024, %s494_s26, [#allocation12], %s3349_s15, %s3349_s15, %s3350_s13  }
  0x28   : > { %s42_s3 = sadd.s32 1, %s3341_s23  ;;  %s39_s18 = ssub.s32 %s3345_s24, %s3518_s17 }
  0x29   : > { %p49_p7 = scmp.ne.s32.totalorder %s3341_s23, %s3337_s22  ;;  %p40_p8 = scmp.eq.s32.totalorder %s39_s18, 0 }
  0x2a   : > { %p50_p9 = scmp.eq.s32.totalorder %s3345_s24, 0  ;;  %p55_p10 = scmp.ne.s32.totalorder %s3337_s22, %s3333_s21 }
  0x2b   : > { %p394_p11 = scmp.eq.s32.totalorder %s3476_s28, 1  ;;  %p400_p0 = scmp.eq.s32.totalorder %s2722_s30, 1 }
  0x2c   : > { %s3530_s1 = scalar_select %p40_p8, %s3341_s23, %s42_s3  }
  0x2d   : > { %p3534_p12 = por %p56_p1, %p55_p10  ;;  %p3538_p13 = por %p394_p11, %p49_p7 }
  0x2e   : > { %p51_p2 = por %p50_p9, %p49_p7  ;;  %s516_s15 = sand.u32 1, %s3341_s23  }
  0x2f   : > { %p3543_p4 = por %p400_p0, %p55_p10  ;;  %p2910_p6 = scmp.lt.s32.totalorder %s3345_s24, 2 }
  0x30   : > { %s4184_s11 = sld [smem:[#allocation19_spill]]  ;;  %s519_s10 = scalar_lea.vmem [#allocation2], %s516_s15 }
  0x31   : > { %s526_s26 = sshll.u32 %s519_s10, 4  ;;  %p3552_p8 = pnand %p2910_p6, %p51_p2  ;;  %s527_s26 = int_to_ptr.vmem [resolvable:$true] %s526_s26 }
  0x32   : > { %s517_s30 = scalar_lea.sflag [#allocation3], %s516_s15 }
  0x33   : > { %p3241_p9 = pneg %p3552_p8 }
  0x36   : > { %s522_s19 = scalar_lea.hbm %s4184_s11, %s3345_s24 }
  0x37   : > { %s524_s25 = sshll.u32 %s522_s19, 4  ;;  %s3244_s19 = scalar_lea.hbm %s4184_s11, 2  ;;  %s525_s25 = int_to_ptr.hbm [resolvable:$true] %s524_s25 }
  0x38   : > { %s3237_s18 = sshra.s32 %s525_s25, 4  ;;  %s3238_s18 = int_to_ptr.hbm [resolvable:$true] %s3237_s18 }
  0x39   : > { %s3239_s2 = scalar_lea.hbm %s3238_s18, 1  ;;  %p3245_p0 = scmp.lt.s32.totalorder %s3238_s18, %s4184_s11 }
  0x3a   : > { %p3240_p7 = scmp.ne.s32.totalorder %s3238_s18, %s3239_s2  ;;  %p3246_p2 = scmp.lt.s32.totalorder %s3244_s19, %s3239_s2 }
  0x3c   : > { %p3242_p10 = pnand %p3241_p9, %p3240_p7  ;;  %p3247_p6 = por %p3246_p2, %p3245_p0 }
  0x3e   : > { %p3243_p11 = pneg %p3242_p10 }
  0x40   : > { %p3248_p5 = pnand %p3247_p6, %p3243_p11 }
  0x42   : > { %3251 = shalt.err (!%p3248_p5)
}
  0x43   : > { %2900 = dma.hbm_to_vmem [thread:$0]  (!%p3552_p8), %s525_s25, 16, %s527_s26, %s517_s30  }
  0x44   : > { %535 = sbr.rel (%p3481_p3) target bundleno = 3992 (0xf98), region = 84  ;;  %s3569_s15 = sand.u32 (!%p3481_p3), 1, %s3337_s22  }
  0x45   : > { %s538_s16 = scalar_lea.sflag (!%p3481_p3), [#allocation3], %s3569_s15  ;;  %s540_s0 = scalar_lea.vmem (!%p3481_p3), [#allocation2], %s3569_s15 }
  0x49   : > { %3312 = dma.done.wait (%p3534_p12), %s538_s16, 16  }
  0x4a   : > { %3314 = vsyncadd (%p3534_p12), %s538_s16, 4294967280 }
  0x4b   : > { %3316 = dma.done.wait (%p56_p1), [#allocation6], 272  }
  0x4c   : > { %3318 = vsyncadd (%p56_p1), [#allocation6], 4294967024 }
  0x4d   : > { %3320 = dma.done.wait (%p56_p1), [#allocation9], 96  }
  0x4e   : > { %3322 = vsyncadd (%p56_p1), [#allocation9], 4294967200 }
  0x4f   : > { %3324 = dma.done.wait (%p56_p1), [#allocation12], 1024  }
  0x50   : > { %3326 = vsyncadd (%p56_p1), [#allocation12], 4294966272  ;;  %v615_v0 = vld [vmem:[#allocation5 + $0x8] sm:$0xff]  ;;  %v614_v1 = vld [vmem:[#allocation5] sm:$0xff]  ;;  %vm617_vm0 = vcmask 130048   ;;  %s4146_s2 = smov 32  }
  0x51   : > { %635 = vmatpush.msra.mxu0 %v615_v0  ;;  %v613_v2 = vld [vmem:[%s540_s0] sm:$0x1]  ;;  %v616_v3 = vld [vmem:[#allocation7] sm:$0x1]  ;;  %s4147_s5 = smov 96   ;;  %s4145_s29 = smov 64  }
  0x52   : > { %v641_v10 = vld [vmem:[#allocation8] sm:$0xf]  ;;  %vm658_vm1 = vcmask 1040384   ;;  %vm660_vm2 = vcmask 1041408   ;;  %vm662_vm3 = vcmask 1042432   ;;  %vm664_vm4 = vcmask 1043456  }
  0x53   : > { %636 = vmatpush.msra.mxu0 %v614_v1  ;;  %v656_v11 = vrot.slane %v641_v10, 4  ;;  %vm668_vm5 = vcmask 261120   ;;  %v3359_v19 = vmov 32.0   ;;  %v709_v31 = vld [vmem:[%s4128_s6 + $0x18] sm:$0xff]  ;;  %v708_v33 = vld [vmem:[%s4128_s6 + $0x10] sm:$0xff]  ;;  %v707_v35 = vld [vmem:[%s4128_s6 + $0x8] sm:$0xff] }
  0x54   : > { %2736 = vmatmul.msk.f32.vlgmr.msra.gmra.mxu0 %vm617_vm0, %v613_v2  ;;  %3013 = vrcp.f32 %v3359_v19  ;;  %v713_v32 = vld [vmem:[%s4129_s7 + $0x18] sm:$0xff]  ;;  %729 = vmatpush.msra.mxu1 %v709_v31  ;;  %v712_v34 = vld [vmem:[%s4129_s7 + $0x10] sm:$0xff]  ;;  %v711_v36 = vld [vmem:[%s4129_s7 + $0x8] sm:$0xff]  ;;  %s4157_s16 = smov 116   ;;  %s4155_s0 = smov 120   ;;  %vm787_vm10 = vcmask 31744  }
  0x55   : > { %749 = vmatpush.msra.mxu2 %v713_v32  ;;  %v706_v37 = vld [vmem:[%s4128_s6] sm:$0xff]  ;;  %v3000_v51 = vld [vmem:[#allocation10] ss:$0 sm:$0xff]  ;;  %s4151_s20 = smov 112   ;;  %s4153_s25 = smov 104   ;;  %vm988_vm11 = vcmask 64512  }
  0x56   : > { %730 = vmatpush.msra.mxu1 %v708_v33  ;;  %v710_v38 = vld [vmem:[%s4129_s7] sm:$0xff]  ;;  %s4159_s26 = smov 124   ;;  %s4161_s3 = smov 108   ;;  %vm1598_vm15 = vcmask 523264  }
  0x57   : > { %750 = vmatpush.msra.mxu2 %v712_v34  ;;  %v2999_v48 = vld [vmem:[%s4126_s4] ss:$0 sm:$0xff]  ;;  %s4149_s30 = smov 100   ;;  %s4186_s18 = sld [smem:[#allocation24_spill]] }
  0x58   : > { %731 = vmatpush.msra.mxu1 %v707_v35  ;;  %s4191_s10 = smov 124   ;;  %s4195_s19 = smov 112  }
  0x59   : > { %751 = vmatpush.msra.mxu2 %v711_v36 }
  0x5a   : > { %v3014_v20 = vpop.eup %3013  ;;  %732 = vmatpush.msra.mxu1 %v706_v37 }
  0x5b   : > { %v673_v21 = vmul.f32 32.0, %v3014_v20  ;;  %vm677_vm6 = vweird.f32 %v3014_v20  ;;  %752 = vmatpush.msra.mxu2 %v710_v38 }
  0x5d   : > { %v674_v22 = vsub.f32 1.0, %v673_v21 }
  0x5f   : > { %v675_v23 = vmul.f32 %v3014_v20, %v674_v22 }
  0x61   : > { %v676_v24 = vadd.f32 %v3014_v20, %v675_v23 }
  0x63   : > { %v3597_v25 = vsel %vm677_vm6, %v3014_v20, %v676_v24 }
  0xd1   : > { %v638_v4 = vpop.f32.mrf.mxu0 }
  0xd2   : > { %v639_v5 = vadd.f32 %v638_v4, %v616_v3 }
  0xd4   : > { %v651_v6 = vrot.slane %v639_v5, 5  ;;  %v643_v7 = vrot.slane %v639_v5, 7  ;;  %v647_v8 = vrot.slane %v639_v5, 6 }
  0xd6   : > { %652 = vrot.lane.b32.xlu1 %v651_v6, %s4146_s2  ;;  %644 = vrot.lane.b32.xlu0 %v643_v7, %s4147_s5  ;;  %s4193_s2 = smov 120  }
  0xde   : > { %648 = vrot.lane.b32.xlu0 %v647_v8, %s4145_s29  ;;  %s4197_s29 = smov 96  }
 0x148   : > { %v645_v9 = vpop.permute.xlu0 %644  ;;  %v653_v14 = vpop.permute.xlu1 %652 }
 0x149   : > { %v659_v12 = vsel %vm658_vm1, %v639_v5, %v645_v9 }
 0x150   : > { %v649_v13 = vpop.permute.xlu0 %648 }
 0x151   : > { %v661_v15 = vsel %vm660_vm2, %v659_v12, %v649_v13 }
 0x152   : > { %v663_v16 = vsel %vm662_vm3, %v661_v15, %v653_v14 }
 0x153   : > { %v3593_v17 = vsel %vm664_vm4, %v663_v16, %v656_v11 }
 0x154   : > { %v669_v18 = vsel %vm668_vm5, %v3593_v17, 0.0 }
 0x155   : > { %670 = vadd.xlane.f32.xlu1 %v669_v18 }
 0x1c8   : > { %v671_v26 = vpop.xlane.xlu1 %670 }
 0x1c9   : > { %v679_v27 = vmul.f32 %v3597_v25, %v671_v26 }
 0x1cb   : > { %v680_v28 = vsub.f32 %v3593_v17, %v679_v27 }
 0x1cd   : > { %v681_v29 = vmul.f32 %v680_v28, %v680_v28 }
 0x1cf   : > { %v682_v30 = vsel %vm668_vm5, %v681_v29, 0.0 }
 0x1d0   : > { %683 = vadd.xlane.f32.xlu2 %v682_v30 }
 0x243   : > { %v684_v39 = vpop.xlane.xlu2 %683 }
 0x244   : > { %v685_v40 = vmul.f32 %v684_v39, %v3597_v25 }
 0x246   : > { %v686_v41 = vadd.f32 1e-05, %v685_v40 }
 0x248   : > { %3015 = vrsqrt.f32 %v686_v41  ;;  %vm693_vm8 = vweird.f32 %v686_v41 }
 0x24e   : > { %v3016_v42 = vpop.eup %3015 }
 0x24f   : > { %v688_v43 = vmul.f32 %v3016_v42, %v686_v41  ;;  %vm694_vm7 = vweird.f32 %v3016_v42 }
 0x250   : > { %vm695_vm9 = vmor %vm693_vm8, %vm694_vm7  ;;  %vm2596_vm7 = vcmask 785408  }
 0x251   : > { %v689_v44 = vmul.f32 %v3016_v42, %v688_v43 }
 0x253   : > { %v690_v45 = vmul.f32 0.5, %v689_v44 }
 0x255   : > { %v691_v46 = vsub.f32 1.5, %v690_v45 }
 0x257   : > { %v692_v47 = vmul.f32 %v3016_v42, %v691_v46 }
 0x259   : > { %v696_v49 = vsel %vm695_vm9, %v3016_v42, %v692_v47 }
 0x25a   : > { %v697_v50 = vmul.f32 %v696_v49, %v680_v28 }
 0x25c   : > { %v701_v52 = vmul.f32 %v2999_v48, %v697_v50 }
 0x25e   : > { %v705_v53 = vadd.f32 %v3000_v51, %v701_v52 }
 0x260   : > { %2737 = vmatmul.msk.f32.vlgmr.msra.gmra.mxu1 %vm668_vm5, %v705_v53  ;;  %2738 = vmatmul.msk.f32.vlgmr.msra.gmra.mxu2 %vm668_vm5, %v705_v53 }
 0x2dd   : > { %v734_v54 = vpop.f32.mrf.mxu1 }
 0x2de   : > { %762 = vrot.lane.b32.xlu1 %v734_v54, %s4157_s16  ;;  %760 = vrot.lane.b32.xlu0 %v734_v54, %s4155_s0 }
 0x2e3   : > { %v3634_v55 = vpop.f32.mrf.mxu2 }
 0x2e4   : > { %775 = vrot.lane.b32.xlu2 %v3634_v55, %s4155_s0  ;;  %2739 = vmatpush.xpose.msk.msrb.mxu1 %vm787_vm10, %v3634_v55  ;;  %s4189_s0 = sld [smem:[#allocation27_spill]] }
 0x2e6   : > { %764 = vrot.lane.b32.xlu0 %v734_v54, %s4151_s20 }
 0x2e7   : > { %2740 = vmatmul.msk.f32.vlgmr.msrb.gmra.mxu1 %vm787_vm10, %v734_v54 }
 0x2ec   : > { %783 = vrot.lane.b32.xlu2 %v3634_v55, %s4153_s25 }
 0x2ee   : > { %768 = vrot.lane.b32.xlu0 %v734_v54, %s4153_s25  ;;  %s4192_s25 = smov 116  }
 0x2f4   : > { %773 = vrot.lane.b32.xlu2 %v3634_v55, %s4159_s26 }
 0x2f6   : > { %779 = vrot.lane.b32.xlu0 %v3634_v55, %s4151_s20  ;;  %s4196_s20 = smov 100  }
 0x2fc   : > { %777 = vrot.lane.b32.xlu2 %v3634_v55, %s4157_s16  ;;  %s4188_s16 = sld [smem:[#allocation26_spill]] }
 0x2fe   : > { %758 = vrot.lane.b32.xlu0 %v734_v54, %s4159_s26  ;;  %s4200_s26 = sld [smem:[#allocation28_spill]] }
 0x304   : > { %766 = vrot.lane.b32.xlu2 %v734_v54, %s4161_s3  ;;  %s3287_s11 = scalar_lea.hbm %s4200_s26, 2 }
 0x306   : > { %781 = vrot.lane.b32.xlu0 %v3634_v55, %s4161_s3  ;;  %s4190_s3 = smov 108  }
 0x30c   : > { %770 = vrot.lane.b32.xlu2 %v734_v54, %s4149_s30 }
 0x30e   : > { %785 = vrot.lane.b32.xlu0 %v3634_v55, %s4149_s30  ;;  %s4187_s30 = sld [smem:[#allocation25_spill]] }
 0x33e   : > { %v3658_v56 = vpop.permute.xlu2 %775 }
 0x33f   : > { %2743 = vmatpush.xpose.msk.msra.mxu3 %vm787_vm10, %v3658_v56  ;;  %v2969_v34 = vpack.i.bf16 %v3658_v56, %v3634_v55 }
 0x346   : > { %v3662_v57 = vpop.permute.xlu2 %783 }
 0x347   : > { %2751 = vmatpush.xpose.msk.msrb.mxu3 %vm787_vm10, %v3662_v57 }
 0x34e   : > { %v3666_v58 = vpop.permute.xlu2 %773 }
 0x34f   : > { %2741 = vmatpush.xpose.msk.msrb.mxu0 %vm787_vm10, %v3666_v58 }
 0x350   : > { %v761_v59 = vpop.permute.xlu0 %760  ;;  %v763_v63 = vpop.permute.xlu1 %762 }
 0x351   : > { %2744 = vmatmul.msk.f32.vlgmr.msra.gmra.mxu3 %vm787_vm10, %v761_v59 }
 0x356   : > { %v3671_v60 = vpop.permute.xlu2 %777 }
 0x357   : > { %v2979_v61 = vpack.i.bf16 %v3671_v60, %v3666_v58  ;;  %2745 = vmatpush.xpose.msk.msra.mxu1 %vm787_vm10, %v3671_v60 }
 0x358   : > { %v765_v62 = vpop.permute.xlu0 %764 }
 0x35a   : > { %2746 = vmatmul.msk.f32.vlgmr.msra.gmra.mxu1 %vm787_vm10, %v763_v63 }
 0x35e   : > { %v767_v8 = vpop.permute.xlu2 %766 }
 0x360   : > { %v769_v0 = vpop.permute.xlu0 %768 }
 0x361   : > { %2752 = vmatmul.msk.f32.vlgmr.msrb.gmra.mxu3 %vm787_vm10, %v769_v0 }
 0x364   : > { %v809_v1 = vpop.f32.mrf.mxu1 }
 0x365   : > { %v980_v2 = vmul.f32 0.5, %v809_v1 }
 0x366   : > { %v771_v10 = vpop.permute.xlu2 %770 }
 0x367   : > { %v989_v3 = vsel %vm988_vm11, %v980_v2, -inf }
 0x368   : > { %v780_v4 = vpop.permute.xlu0 %779  ;;  %990 = vmax.xlane.f32.xlu0 %v989_v3 }
 0x369   : > { %v2974_v5 = vpack.i.bf16 %v3662_v57, %v780_v4  ;;  %2747 = vmatpush.xpose.msk.msrb.mxu2 %vm787_vm10, %v780_v4 }
 0x36c   : > { %2748 = vmatmul.msk.f32.vlgmr.msrb.gmra.mxu2 %vm787_vm10, %v765_v62 }
 0x370   : > { %v759_v6 = vpop.permute.xlu0 %758 }
 0x371   : > { %2742 = vmatmul.msk.f32.vlgmr.msrb.gmra.mxu0 %vm787_vm10, %v759_v6 }
 0x378   : > { %v782_v7 = vpop.permute.xlu0 %781 }
 0x379   : > { %2749 = vmatpush.xpose.msk.msra.mxu0 %vm787_vm10, %v782_v7 }
 0x37c   : > { %2750 = vmatmul.msk.f32.vlgmr.msra.gmra.mxu0 %vm787_vm10, %v767_v8 }
 0x380   : > { %v3686_v9 = vpop.permute.xlu0 %785 }
 0x381   : > { %2753 = vmatpush.xpose.msk.msrb.mxu1 %vm787_vm10, %v3686_v9 }
 0x384   : > { %2754 = vmatmul.msk.f32.vlgmr.msrb.gmra.mxu1 %vm787_vm10, %v771_v10 }
 0x3d4   : > { %v857_v11 = vpop.f32.mrf.mxu3 }
 0x3d5   : > { %v982_v12 = vmul.f32 0.5, %v857_v11 }
 0x3d7   : > { %v881_v13 = vpop.f32.mrf.mxu1  ;;  %v995_v14 = vsel %vm988_vm11, %v982_v12, -inf }
 0x3d8   : > { %v983_v15 = vmul.f32 0.5, %v881_v13  ;;  %996 = vmax.xlane.f32.xlu2 %v995_v14 }
 0x3da   : > { %v998_v16 = vsel %vm988_vm11, %v983_v15, -inf }
 0x3db   : > { %999 = vmax.xlane.f32.xlu1 %v998_v16  ;;  %v991_v35 = vpop.xlane.xlu0 %990 }
 0x3dc   : > { %v1013_v36 = vsub.f32 %v980_v2, %v991_v35 }
 0x3de   : > { %v1021_v37 = vmul.f32 1.442695, %v1013_v36 }
 0x3e0   : > { %3017 = vpow2.f32 %v1021_v37 }
 0x3e4   : > { %v953_v28 = vpop.f32.mrf.mxu3 }
 0x3e5   : > { %v986_v29 = vmul.f32 0.5, %v953_v28 }
 0x3e6   : > { %v3705_v38 = vpop.eup %3017 }
 0x3e7   : > { %v1007_v32 = vsel %vm988_vm11, %v986_v29, -inf  ;;  %v1037_v39 = vsel %vm988_vm11, %v3705_v38, 0.0 }
 0x3ee   : > { %v833_v18 = vpop.f32.mrf.mxu0 }
 0x3ef   : > { %v981_v19 = vmul.f32 0.5, %v833_v18  ;;  %v905_v20 = vpop.f32.mrf.mxu2 }
 0x3f0   : > { %v984_v21 = vmul.f32 0.5, %v905_v20 }
 0x3f1   : > { %v992_v22 = vsel %vm988_vm11, %v981_v19, -inf }
 0x3f2   : > { %993 = vmax.xlane.f32.xlu0 %v992_v22  ;;  %v1001_v23 = vsel %vm988_vm11, %v984_v21, -inf }
 0x3f3   : > { %1002 = vmax.xlane.f32.xlu1 %v1001_v23 }
 0x3f9   : > { %v929_v24 = vpop.f32.mrf.mxu0 }
 0x3fa   : > { %v985_v26 = vmul.f32 0.5, %v929_v24 }
 0x3fc   : > { %v1004_v27 = vsel %vm988_vm11, %v985_v26, -inf }
 0x3fd   : > { %1005 = vmax.xlane.f32.xlu2 %v1004_v27 }
 0x401   : > { %v977_v30 = vpop.f32.mrf.mxu1 }
 0x402   : > { %v3696_v31 = vmul.f32 0.5, %v977_v30 }
 0x404   : > { %v1010_v33 = vsel %vm988_vm11, %v3696_v31, -inf }
 0x405   : > { %1008 = vmax.xlane.f32.xlu2 %v1007_v32  ;;  %1011 = vmax.xlane.f32.xlu0 %v1010_v33 }
 0x40c   : > { %2970 = vrot.lane.b32.xlu1 %v2969_v34, %s4147_s5 }
 0x41d   : > { %2975 = vrot.lane.b32.xlu2 %v2974_v5, %s4147_s5 }
 0x436   : > { %1038 = vadd.xlane.f32.xlu1 %v1037_v39 }
 0x44b   : > { %v997_v40 = vpop.xlane.xlu2 %996 }
 0x44c   : > { %v1015_v41 = vsub.f32 %v982_v12, %v997_v40 }
 0x44e   : > { %v1025_v42 = vmul.f32 1.442695, %v1015_v41  ;;  %v1000_v45 = vpop.xlane.xlu1 %999 }
 0x44f   : > { %2980 = vrot.lane.b32.xlu1 %v2979_v61, %s4147_s5  ;;  %v1016_v53 = vsub.f32 %v983_v15, %v1000_v45 }
 0x450   : > { %3019 = vpow2.f32 %v1025_v42 }
 0x451   : > { %v1027_v56 = vmul.f32 1.442695, %v1016_v53  ;;  %v1289_v53 = vld [vmem:[%s4130_s8 + $0x10] sm:$0xf] }
 0x456   : > { %v3713_v43 = vpop.eup %3019 }
 0x457   : > { %1207 = vrot.lane.b32.xlu1 %v782_v7, %s4147_s5  ;;  %v1043_v44 = vsel %vm988_vm11, %v3713_v43, 0.0 }
 0x458   : > { %1044 = vadd.xlane.f32.xlu2 %v1043_v44 }
 0x465   : > { %v994_v46 = vpop.xlane.xlu0 %993 }
 0x466   : > { %v1014_v47 = vsub.f32 %v981_v19, %v994_v46  ;;  %v1003_v48 = vpop.xlane.xlu1 %1002 }
 0x467   : > { %v1017_v50 = vsub.f32 %v984_v21, %v1003_v48  ;;  %v1285_v48 = vld [vmem:[%s4130_s8] sm:$0xf] }
 0x468   : > { %v1023_v49 = vmul.f32 1.442695, %v1014_v47 }
 0x469   : > { %v1029_v51 = vmul.f32 1.442695, %v1017_v50  ;;  %v1287_v50 = vld [vmem:[%s4130_s8 + $0x8] sm:$0xf] }
 0x46a   : > { %3021 = vpow2.f32 %v1023_v49 }
 0x46b   : > { %3023 = vpow2.f32 %v1029_v51  ;;  %v1286_v51 = vld [vmem:[%s4130_s8 + $0x4] sm:$0xf] }
 0x46c   : > { %3025 = vpow2.f32 %v1027_v56  ;;  %v1291_v56 = vld [vmem:[%s4130_s8 + $0x18] sm:$0xf] }
 0x470   : > { %v3718_v52 = vpop.eup %3021  ;;  %v1006_v54 = vpop.xlane.xlu2 %1005 }
 0x471   : > { %v1040_v55 = vsel %vm988_vm11, %v3718_v52, 0.0  ;;  %v3722_v57 = vpop.eup %3023  ;;  %v1018_v58 = vsub.f32 %v985_v26, %v1006_v54  ;;  %v1288_v54 = vld [vmem:[%s4130_s8 + $0xc] sm:$0xf] }
 0x472   : > { %1041 = vadd.xlane.f32.xlu0 %v1040_v55  ;;  %v1049_v61 = vsel %vm988_vm11, %v3722_v57, 0.0  ;;  %v3026_v1 = vpop.eup %3025  ;;  %v1290_v55 = vld [vmem:[%s4130_s8 + $0x14] sm:$0xf] }
 0x473   : > { %v1031_v63 = vmul.f32 1.442695, %v1018_v58  ;;  %v1046_v10 = vsel %vm988_vm11, %v3026_v1, 0.0  ;;  %v1292_v58 = vld [vmem:[%s4130_s8 + $0x1c] sm:$0xf] }
 0x478   : > { %v1009_v59 = vpop.xlane.xlu2 %1008  ;;  %v1012_v0 = vpop.xlane.xlu0 %1011 }
 0x479   : > { %v1019_v60 = vsub.f32 %v986_v29, %v1009_v59  ;;  %v1020_v5 = vsub.f32 %v3696_v31, %v1012_v0 }
 0x47a   : > { %1050 = vadd.xlane.f32.xlu0 %v1049_v61 }
 0x47b   : > { %v1033_v62 = vmul.f32 1.442695, %v1019_v60  ;;  %v1035_v12 = vmul.f32 1.442695, %v1020_v5 }
 0x47d   : > { %3027 = vpow2.f32 %v1033_v62 }
 0x47e   : > { %v2971_v2 = vpop.permute.xlu1 %2970  ;;  %3029 = vpow2.f32 %v1031_v63 }
 0x47f   : > { %v2973_v3 = vunpack.i.h.bf16 %v2971_v2  ;;  %v2972_v4 = vunpack.i.l.bf16 %v2971_v2  ;;  %3031 = vpow2.f32 %v1035_v12 }
 0x480   : > { %v2976_v6 = vpop.permute.xlu2 %2975 }
 0x481   : > { %v2978_v7 = vunpack.i.h.bf16 %v2976_v6  ;;  %v2977_v8 = vunpack.i.l.bf16 %v2976_v6  ;;  %1098 = vmatpush.msra.mxu2 %v2972_v4  ;;  %1150 = vmatpush.msra.mxu3 %v2973_v3 }
 0x482   : > { %1047 = vadd.xlane.f32.xlu0 %v1046_v10 }
 0x483   : > { %v3028_v11 = vpop.eup %3027  ;;  %1202 = vmatpush.msrb.mxu2 %v2977_v8  ;;  %1254 = vmatpush.msrb.mxu3 %v2978_v7 }
 0x484   : > { %v1055_v13 = vsel %vm988_vm11, %v3028_v11, 0.0  ;;  %v3030_v14 = vpop.eup %3029 }
 0x485   : > { %1056 = vadd.xlane.f32.xlu2 %v1055_v13  ;;  %v1052_v15 = vsel %vm988_vm11, %v3030_v14, 0.0  ;;  %v3032_v16 = vpop.eup %3031 }
 0x486   : > { %v1058_v18 = vsel %vm988_vm11, %v3032_v16, 0.0 }
 0x48a   : > { %1053 = vadd.xlane.f32.xlu0 %v1052_v15 }
 0x492   : > { %1059 = vadd.xlane.f32.xlu0 %v1058_v18 }
 0x49d   : > { %1259 = vrot.lane.b32.xlu2 %v3686_v9, %s4147_s5  ;;  %s4194_s5 = smov 104  }
 0x4a9   : > { %v1039_v19 = vpop.xlane.xlu1 %1038 }
 0x4aa   : > { %3033 = vrcp.f32 %v1039_v19 }
 0x4b0   : > { %v3034_v20 = vpop.eup %3033 }
 0x4b1   : > { %v1069_v21 = vmul.f32 %v3034_v20, %v3705_v38 }
 0x4b3   : > { %2755 = vmatmul.msk.f32.vlgmr.msra.gmra.mxu2 %vm988_vm11, %v1069_v21 }
 0x4b4   : > { %2763 = vmatpush.msk.msra.mxu2 %vm664_vm4, %v1285_v48 }
 0x4c1   : > { %v2981_v22 = vpop.permute.xlu1 %2980 }
 0x4c2   : > { %v2983_v23 = vunpack.i.h.bf16 %v2981_v22  ;;  %v2982_v24 = vunpack.i.l.bf16 %v2981_v22 }
 0x4c4   : > { %1124 = vmatpush.msrb.mxu0 %v2982_v24  ;;  %1176 = vmatpush.msra.mxu1 %v2983_v23  ;;  %v3001_v24 = vld [vmem:[%s4131_s9] ss:$0 sm:$0xff] }
 0x4c9   : > { %v1208_v26 = vpop.permute.xlu1 %1207 }
 0x4ca   : > { %1228 = vmatpush.msra.mxu0 %v1208_v26 }
 0x4cb   : > { %v1045_v27 = vpop.xlane.xlu2 %1044 }
 0x4cc   : > { %3035 = vrcp.f32 %v1045_v27 }
 0x4d2   : > { %v3036_v28 = vpop.eup %3035 }
 0x4d3   : > { %v1071_v29 = vmul.f32 %v3036_v28, %v3713_v43 }
 0x4d5   : > { %2757 = vmatmul.msk.f32.vlgmr.msra.gmra.mxu3 %vm988_vm11, %v1071_v29 }
 0x4d6   : > { %2767 = vmatpush.msk.msra.mxu3 %vm664_vm4, %v1287_v50 }
 0x4e5   : > { %v1042_v9 = vpop.xlane.xlu0 %1041 }
 0x4e6   : > { %3037 = vrcp.f32 %v1042_v9 }
 0x4ec   : > { %v3038_v30 = vpop.eup %3037 }
 0x4ed   : > { %v1070_v31 = vmul.f32 %v3038_v30, %v3718_v52  ;;  %v1051_v32 = vpop.xlane.xlu0 %1050 }
 0x4ee   : > { %3039 = vrcp.f32 %v1051_v32 }
 0x4ef   : > { %2756 = vmatmul.msk.f32.vlgmr.msrb.gmra.mxu0 %vm988_vm11, %v1070_v31 }
 0x4f0   : > { %2765 = vmatpush.msk.msrb.mxu0 %vm664_vm4, %v1286_v51  ;;  %v3002_v51 = vld [vmem:[%s4186_s18] ss:$0 sm:$0xff] }
 0x4f4   : > { %v3040_v33 = vpop.eup %3039 }
 0x4f5   : > { %v1073_v34 = vmul.f32 %v3040_v33, %v3722_v57  ;;  %v1048_v35 = vpop.xlane.xlu0 %1047 }
 0x4f6   : > { %3041 = vrcp.f32 %v1048_v35  ;;  %v1556_v35 = vld [vmem:[#allocation11 + $0x10] sm:$0xff] }
 0x4f7   : > { %2759 = vmatmul.msk.f32.vlgmr.msrb.gmra.mxu2 %vm988_vm11, %v1073_v34  ;;  %v1557_v34 = vld [vmem:[#allocation11 + $0x18] sm:$0xff] }
 0x4f8   : > { %v1057_v36 = vpop.xlane.xlu2 %1056  ;;  %2771 = vmatpush.msk.msrb.mxu2 %vm664_vm4, %v1289_v53 }
 0x4f9   : > { %3043 = vrcp.f32 %v1057_v36  ;;  %v1555_v36 = vld [vmem:[#allocation11 + $0x8] sm:$0xff] }
 0x4fc   : > { %v3042_v37 = vpop.eup %3041 }
 0x4fd   : > { %v1072_v38 = vmul.f32 %v3042_v37, %v3026_v1  ;;  %v1054_v39 = vpop.xlane.xlu0 %1053  ;;  %v1554_v37 = vld [vmem:[#allocation11] sm:$0xff] }
 0x4fe   : > { %3045 = vrcp.f32 %v1054_v39  ;;  %v1563_v39 = vld [vmem:[%s4136_s14 + $0x28] sm:$0xff] }
 0x4ff   : > { %v3044_v40 = vpop.eup %3043  ;;  %2758 = vmatmul.msk.f32.vlgmr.msra.gmra.mxu1 %vm988_vm11, %v1072_v38  ;;  %v1564_v38 = vld [vmem:[%s4136_s14 + $0x30] sm:$0xff] }
 0x500   : > { %v1075_v41 = vmul.f32 %v3044_v40, %v3028_v11  ;;  %v1260_v42 = vpop.permute.xlu2 %1259 }
 0x501   : > { %1280 = vmatpush.msrb.mxu1 %v1260_v42  ;;  %v1562_v42 = vld [vmem:[%s4136_s14 + $0x20] sm:$0xff] }
 0x502   : > { %2761 = vmatmul.msk.f32.vlgmr.msrb.gmra.mxu3 %vm988_vm11, %v1075_v41 }
 0x503   : > { %2769 = vmatpush.msk.msra.mxu1 %vm664_vm4, %v1288_v54  ;;  %2775 = vmatpush.msk.msrb.mxu3 %vm664_vm4, %v1291_v56  ;;  %v3003_v54 = vld [vmem:[%s4187_s30] ss:$0 sm:$0xff] }
 0x504   : > { %v3046_v43 = vpop.eup %3045 }
 0x505   : > { %v1074_v44 = vmul.f32 %v3046_v43, %v3030_v14  ;;  %v1060_v45 = vpop.xlane.xlu0 %1059 }
 0x506   : > { %3047 = vrcp.f32 %v1060_v45 }
 0x507   : > { %2760 = vmatmul.msk.f32.vlgmr.msra.gmra.mxu0 %vm988_vm11, %v1074_v44  ;;  %v1561_v44 = vld [vmem:[%s4136_s14 + $0x18] sm:$0xff] }
 0x508   : > { %2773 = vmatpush.msk.msra.mxu0 %vm664_vm4, %v1290_v55 }
 0x50c   : > { %v3048_v46 = vpop.eup %3047 }
 0x50d   : > { %v1076_v47 = vmul.f32 %v3048_v46, %v3032_v16 }
 0x50f   : > { %2762 = vmatmul.msk.f32.vlgmr.msrb.gmra.mxu1 %vm988_vm11, %v1076_v47 }
 0x510   : > { %2777 = vmatpush.msk.msrb.mxu1 %vm664_vm4, %v1292_v58  ;;  %v1559_v58 = vld [vmem:[%s4136_s14 + $0x8] sm:$0xff] }
 0x536   : > { %v1100_v49 = vpop.f32.mrf.mxu2 }
 0x537   : > { %2764 = vmatmul.msk.f32.vlgmr.msra.gmra.mxu2 %vm787_vm10, %v1100_v49 }
 0x538   : > { %1585 = vmatpush.msra.mxu2 %v1557_v34 }
 0x53a   : > { %1586 = vmatpush.msra.mxu2 %v1556_v35 }
 0x53c   : > { %1587 = vmatpush.msra.mxu2 %v1555_v36 }
 0x53e   : > { %1588 = vmatpush.msra.mxu2 %v1554_v37 }
 0x558   : > { %v1152_v52 = vpop.f32.mrf.mxu3 }
 0x559   : > { %2768 = vmatmul.msk.f32.vlgmr.msra.gmra.mxu3 %vm787_vm10, %v1152_v52 }
 0x56c   : > { %v1126_v57 = vpop.f32.mrf.mxu0 }
 0x56d   : > { %2766 = vmatmul.msk.f32.vlgmr.msrb.gmra.mxu0 %vm787_vm10, %v1126_v57  ;;  %v1560_v57 = vld [vmem:[%s4136_s14 + $0x10] sm:$0xff] }
 0x57a   : > { %v1204_v59 = vpop.f32.mrf.mxu2 }
 0x57b   : > { %2772 = vmatmul.msk.f32.vlgmr.msrb.gmra.mxu2 %vm787_vm10, %v1204_v59  ;;  %v1558_v59 = vld [vmem:[%s4136_s14] sm:$0xff] }
 0x57c   : > { %v1178_v60 = vpop.f32.mrf.mxu1 }
 0x57d   : > { %2770 = vmatmul.msk.f32.vlgmr.msra.gmra.mxu1 %vm787_vm10, %v1178_v60  ;;  %v3004_v60 = vld [vmem:[%s4188_s16] ss:$0 sm:$0xff] }
 0x584   : > { %v1230_v61 = vpop.f32.mrf.mxu0 }
 0x585   : > { %v1256_v62 = vpop.f32.mrf.mxu3  ;;  %2774 = vmatmul.msk.f32.vlgmr.msra.gmra.mxu0 %vm787_vm10, %v1230_v61 }
 0x586   : > { %2776 = vmatmul.msk.f32.vlgmr.msrb.gmra.mxu3 %vm787_vm10, %v1256_v62 }
 0x58c   : > { %v1282_v63 = vpop.f32.mrf.mxu1 }
 0x58d   : > { %2778 = vmatmul.msk.f32.vlgmr.msrb.gmra.mxu1 %vm787_vm10, %v1282_v63 }
 0x5ba   : > { %v1316_v0 = vpop.f32.mrf.mxu2 }
 0x5bb   : > { %v1501_v3 = vsel %vm668_vm5, %v1316_v0, 0.0  ;;  %v3005_v0 = vld [vmem:[%s4189_s0] ss:$0 sm:$0xff] }
 0x5dc   : > { %v1368_v4 = vpop.f32.mrf.mxu3 }
 0x5dd   : > { %v1504_v8 = vsel %vm668_vm5, %v1368_v4, 0.0 }
 0x5ea   : > { %v1342_v1 = vpop.f32.mrf.mxu0 }
 0x5eb   : > { %v1502_v2 = vsel %vm668_vm5, %v1342_v1, 0.0 }
 0x5ec   : > { %v1503_v5 = vadd.f32 %v1502_v2, %v1501_v3 }
 0x5ee   : > { %v1505_v11 = vadd.f32 %v1504_v8, %v1503_v5 }
 0x5fa   : > { %v1394_v6 = vpop.f32.mrf.mxu1 }
 0x5fb   : > { %v1506_v10 = vsel %vm668_vm5, %v1394_v6, 0.0 }
 0x5fc   : > { %v1507_v14 = vadd.f32 %v1506_v10, %v1505_v11  ;;  %v2785_v11 = vld [vmem:[%s4128_s6 + $0x38] sm:$0xff] }
 0x5fd   : > { %1682 = vmatpush.msra.mxu3 %v2785_v11 }
 0x5fe   : > { %v1420_v7 = vpop.f32.mrf.mxu2 }
 0x5ff   : > { %v1508_v13 = vsel %vm668_vm5, %v1420_v7, 0.0 }
 0x600   : > { %v1509_v16 = vadd.f32 %v1508_v13, %v1507_v14  ;;  %v2784_v13 = vld [vmem:[%s4128_s6 + $0x30] sm:$0xff] }
 0x601   : > { %v2788_v14 = vld [vmem:[%s4129_s7 + $0x30] sm:$0xff]  ;;  %1683 = vmatpush.msra.mxu3 %v2784_v13 }
 0x602   : > { %v1446_v12 = vpop.f32.mrf.mxu0 }
 0x603   : > { %v1510_v15 = vsel %vm668_vm5, %v1446_v12, 0.0  ;;  %v2789_v12 = vld [vmem:[%s4129_s7 + $0x38] sm:$0xff] }
 0x604   : > { %v1511_v18 = vadd.f32 %v1510_v15, %v1509_v16  ;;  %1702 = vmatpush.msra.mxu1 %v2789_v12  ;;  %v2783_v15 = vld [vmem:[%s4128_s6 + $0x28] sm:$0xff] }
 0x605   : > { %v2787_v16 = vld [vmem:[%s4129_s7 + $0x28] sm:$0xff]  ;;  %1684 = vmatpush.msra.mxu3 %v2783_v15 }
 0x606   : > { %1703 = vmatpush.msra.mxu1 %v2788_v14 }
 0x608   : > { %1704 = vmatpush.msra.mxu1 %v2787_v16 }
 0x609   : > { %v1472_v19 = vpop.f32.mrf.mxu3 }
 0x60a   : > { %v1512_v20 = vsel %vm668_vm5, %v1472_v19, 0.0  ;;  %v1498_v21 = vpop.f32.mrf.mxu1  ;;  %v2786_v19 = vld [vmem:[%s4129_s7 + $0x20] sm:$0xff] }
 0x60b   : > { %v1513_v22 = vadd.f32 %v1512_v20, %v1511_v18  ;;  %v1514_v23 = vsel %vm668_vm5, %v1498_v21, 0.0  ;;  %v2782_v18 = vld [vmem:[%s4128_s6 + $0x20] sm:$0xff]  ;;  %1705 = vmatpush.msra.mxu1 %v2786_v19 }
 0x60c   : > { %1685 = vmatpush.msra.mxu3 %v2782_v18 }
 0x60d   : > { %v1515_v26 = vadd.f32 %v1514_v23, %v1513_v22 }
 0x60f   : > { %v1520_v27 = vadd.f32 %v3001_v24, %v1515_v26 }
 0x611   : > { %v1521_v28 = vadd.f32 %v1520_v27, %v3593_v17  ;;  %v1565_v17 = vld [vmem:[%s4136_s14 + $0x38] sm:$0xff] }
 0x612   : > { %1610 = vmatpush.msrb.mxu0 %v1565_v17 }
 0x613   : > { %v1524_v29 = vsel %vm668_vm5, %v1521_v28, 0.0 }
 0x614   : > { %1525 = vadd.xlane.f32.xlu0 %v1524_v29  ;;  %1611 = vmatpush.msrb.mxu0 %v1564_v38 }
 0x616   : > { %1612 = vmatpush.msrb.mxu0 %v1563_v39 }
 0x618   : > { %1613 = vmatpush.msrb.mxu0 %v1562_v42 }
 0x61a   : > { %1614 = vmatpush.msrb.mxu0 %v1561_v44 }
 0x61c   : > { %1615 = vmatpush.msrb.mxu0 %v1560_v57 }
 0x61e   : > { %1616 = vmatpush.msrb.mxu0 %v1559_v58 }
 0x620   : > { %1617 = vmatpush.msrb.mxu0 %v1558_v59 }
 0x687   : > { %v1526_v9 = vpop.xlane.xlu0 %1525 }
 0x688   : > { %v1527_v30 = vmul.f32 %v1526_v9, %v3597_v25  ;;  %v3006_v9 = vld [vmem:[%s4126_s4 + $0x1] ss:$0 sm:$0xff] }
 0x68a   : > { %v1528_v31 = vsub.f32 %v1521_v28, %v1527_v30 }
 0x68c   : > { %v1529_v32 = vmul.f32 %v1528_v31, %v1528_v31 }
 0x68e   : > { %v1530_v33 = vsel %vm668_vm5, %v1529_v32, 0.0  ;;  %v3007_v32 = vld [vmem:[#allocation10 + $0x1] ss:$0 sm:$0xff] }
 0x68f   : > { %1531 = vadd.xlane.f32.xlu1 %v1530_v33 }
 0x702   : > { %v1532_v40 = vpop.xlane.xlu1 %1531 }
 0x703   : > { %v1533_v41 = vmul.f32 %v1532_v40, %v3597_v25 }
 0x705   : > { %v1534_v43 = vadd.f32 1e-05, %v1533_v41 }
 0x707   : > { %3049 = vrsqrt.f32 %v1534_v43  ;;  %vm1541_vm13 = vweird.f32 %v1534_v43 }
 0x70d   : > { %v3050_v45 = vpop.eup %3049 }
 0x70e   : > { %v1536_v46 = vmul.f32 %v3050_v45, %v1534_v43  ;;  %vm1542_vm12 = vweird.f32 %v3050_v45 }
 0x70f   : > { %vm1543_vm14 = vmor %vm1541_vm13, %vm1542_vm12 }
 0x710   : > { %v1537_v47 = vmul.f32 %v3050_v45, %v1536_v46 }
 0x712   : > { %v1538_v48 = vmul.f32 0.5, %v1537_v47 }
 0x714   : > { %v1539_v49 = vsub.f32 1.5, %v1538_v48 }
 0x716   : > { %v1540_v50 = vmul.f32 %v3050_v45, %v1539_v49 }
 0x718   : > { %v1544_v52 = vsel %vm1543_vm14, %v3050_v45, %v1540_v50 }
 0x719   : > { %v1545_v53 = vmul.f32 %v1544_v52, %v1528_v31 }
 0x71b   : > { %v1549_v55 = vmul.f32 %v3002_v51, %v1545_v53 }
 0x71d   : > { %v1553_v56 = vadd.f32 %v3003_v54, %v1549_v55 }
 0x71f   : > { %2779 = vmatmul.msk.f32.vlgmr.msra.gmra.mxu2 %vm668_vm5, %v1553_v56 }
 0x7a2   : > { %v1590_v61 = vpop.f32.mrf.mxu2 }
 0x7a3   : > { %v1591_v62 = vadd.f32 %v3004_v60, %v1590_v61 }
 0x7a5   : > { %v1593_v63 = vmax.f32 %v1591_v62, 0.0 }
 0x7a7   : > { %2780 = vmatmul.msk.f32.vlgmr.msrb.gmra.mxu0 %vm1598_vm15, %v1593_v63 }
 0x824   : > { %v1619_v1 = vpop.f32.mrf.mxu0 }
 0x825   : > { %v1620_v2 = vadd.f32 %v3005_v0, %v1619_v1 }
 0x827   : > { %v3839_v3 = vadd.f32 %v1620_v2, %v1521_v28 }
 0x829   : > { %v1627_v4 = vsel %vm668_vm5, %v3839_v3, 0.0 }
 0x82a   : > { %1628 = vadd.xlane.f32.xlu2 %v1627_v4 }
 0x89d   : > { %v1629_v5 = vpop.xlane.xlu2 %1628 }
 0x89e   : > { %v1630_v6 = vmul.f32 %v1629_v5, %v3597_v25 }
 0x8a0   : > { %v1631_v7 = vsub.f32 %v3839_v3, %v1630_v6 }
 0x8a2   : > { %v1632_v8 = vmul.f32 %v1631_v7, %v1631_v7 }
 0x8a4   : > { %v1633_v10 = vsel %vm668_vm5, %v1632_v8, 0.0 }
 0x8a5   : > { %1634 = vadd.xlane.f32.xlu0 %v1633_v10 }
 0x918   : > { %v1635_v20 = vpop.xlane.xlu0 %1634 }
 0x919   : > { %v1636_v21 = vmul.f32 %v1635_v20, %v3597_v25 }
 0x91b   : > { %v1637_v22 = vadd.f32 1e-05, %v1636_v21 }
 0x91d   : > { %3051 = vrsqrt.f32 %v1637_v22  ;;  %vm1644_vm1 = vweird.f32 %v1637_v22 }
 0x923   : > { %v3052_v23 = vpop.eup %3051 }
 0x924   : > { %v1639_v24 = vmul.f32 %v3052_v23, %v1637_v22  ;;  %vm1645_vm0 = vweird.f32 %v3052_v23 }
 0x925   : > { %vm1646_vm2 = vmor %vm1644_vm1, %vm1645_vm0 }
 0x926   : > { %v1640_v26 = vmul.f32 %v3052_v23, %v1639_v24 }
 0x928   : > { %v1641_v27 = vmul.f32 0.5, %v1640_v26 }
 0x92a   : > { %v1642_v28 = vsub.f32 1.5, %v1641_v27 }
 0x92c   : > { %v1643_v29 = vmul.f32 %v3052_v23, %v1642_v28 }
 0x92e   : > { %v1647_v30 = vsel %vm1646_vm2, %v3052_v23, %v1643_v29 }
 0x92f   : > { %v1648_v31 = vmul.f32 %v1647_v30, %v1631_v7 }
 0x931   : > { %v1652_v33 = vmul.f32 %v3006_v9, %v1648_v31 }
 0x933   : > { %v1656_v34 = vadd.f32 %v3007_v32, %v1652_v33 }
 0x935   : > { %2790 = vmatmul.msk.f32.vlgmr.msra.gmra.mxu3 %vm668_vm5, %v1656_v34  ;;  %2791 = vmatmul.msk.f32.vlgmr.msra.gmra.mxu1 %vm668_vm5, %v1656_v34 }
 0x9b2   : > { %v3876_v35 = vpop.f32.mrf.mxu1 }
 0x9b3   : > { %1734 = vrot.lane.b32.xlu2 %v3876_v35, %s4190_s3  ;;  %1726 = vrot.lane.b32.xlu0 %v3876_v35, %s4191_s10 }
 0x9b4   : > { %2792 = vmatpush.xpose.msk.msrb.mxu2 %vm787_vm10, %v3876_v35 }
 0x9b8   : > { %v1687_v36 = vpop.f32.mrf.mxu3 }
 0x9b9   : > { %1715 = vrot.lane.b32.xlu1 %v1687_v36, %s4192_s25  ;;  %2793 = vmatmul.msk.f32.vlgmr.msrb.gmra.mxu2 %vm787_vm10, %v1687_v36 }
 0x9bb   : > { %1730 = vrot.lane.b32.xlu0 %v3876_v35, %s4192_s25  ;;  %1713 = vrot.lane.b32.xlu2 %v1687_v36, %s4193_s2 }
 0x9c1   : > { %1728 = vrot.lane.b32.xlu1 %v3876_v35, %s4193_s2 }
 0x9c3   : > { %1736 = vrot.lane.b32.xlu2 %v3876_v35, %s4194_s5  ;;  %1711 = vrot.lane.b32.xlu0 %v1687_v36, %s4191_s10  ;;  %s612_s10 = scalar_lea.vmem [#allocation13], %s3569_s15 }
 0x9c4   : > { %s2610_s25 = sshll.u32 %s612_s10, 4  ;;  %s2611_s25 = int_to_ptr.vmem [resolvable:$true] %s2610_s25 }
 0x9c9   : > { %1717 = vrot.lane.b32.xlu1 %v1687_v36, %s4195_s19 }
 0x9cb   : > { %1738 = vrot.lane.b32.xlu0 %v3876_v35, %s4196_s20 }
 0x9d3   : > { %1719 = vrot.lane.b32.xlu0 %v1687_v36, %s4190_s3  ;;  %s2608_s3 = scalar_lea.hbm %s4200_s26, %s3476_s28 }
 0x9d4   : > { %s2612_s2 = sshll.u32 %s2608_s3, 4  ;;  %s2613_s2 = int_to_ptr.hbm [resolvable:$true] %s2612_s2 }
 0x9db   : > { %1723 = vrot.lane.b32.xlu0 %v1687_v36, %s4196_s20 }
 0x9e3   : > { %1732 = vrot.lane.b32.xlu0 %v3876_v35, %s4195_s19  ;;  %s4199_s19 = smov 64  }
 0x9eb   : > { %1721 = vrot.lane.b32.xlu0 %v1687_v36, %s4194_s5  ;;  %s4198_s5 = smov 32  }
 0xa0d   : > { %v3902_v37 = vpop.permute.xlu2 %1734 }
 0xa15   : > { %v1714_v38 = vpop.permute.xlu2 %1713 }
 0xa1d   : > { %v3915_v43 = vpop.permute.xlu2 %1736 }
 0xa25   : > { %v3904_v17 = vpop.permute.xlu0 %1726 }
 0xa26   : > { %2794 = vmatpush.xpose.msk.msrb.mxu3 %vm787_vm10, %v3904_v17 }
 0xa2a   : > { %2802 = vmatpush.xpose.msk.msra.mxu3 %vm787_vm10, %v3902_v37 }
 0xa2b   : > { %v1716_v39 = vpop.permute.xlu1 %1715 }
 0xa2d   : > { %v1731_v40 = vpop.permute.xlu0 %1730 }
 0xa2e   : > { %v2984_v41 = vpack.i.bf16 %v1731_v40, %v3904_v17  ;;  %2798 = vmatpush.xpose.msk.msra.mxu2 %vm787_vm10, %v1731_v40 }
 0xa31   : > { %2799 = vmatmul.msk.f32.vlgmr.msra.gmra.mxu2 %vm787_vm10, %v1716_v39 }
 0xa33   : > { %v3913_v42 = vpop.permute.xlu1 %1728 }
 0xa34   : > { %2796 = vmatpush.xpose.msk.msrb.mxu1 %vm787_vm10, %v3913_v42 }
 0xa35   : > { %v1712_v44 = vpop.permute.xlu0 %1711 }
 0xa36   : > { %2795 = vmatmul.msk.f32.vlgmr.msrb.gmra.mxu3 %vm787_vm10, %v1712_v44 }
 0xa37   : > { %2797 = vmatmul.msk.f32.vlgmr.msrb.gmra.mxu1 %vm787_vm10, %v1714_v38 }
 0xa38   : > { %2804 = vmatpush.xpose.msk.msra.mxu1 %vm787_vm10, %v3915_v43 }
 0xa3b   : > { %v1718_v53 = vpop.permute.xlu1 %1717 }
 0xa3c   : > { %v1761_v45 = vpop.f32.mrf.mxu2 }
 0xa3d   : > { %v1932_v46 = vmul.f32 0.5, %v1761_v45  ;;  %v3923_v47 = vpop.permute.xlu0 %1738 }
 0xa3e   : > { %v2994_v48 = vpack.i.bf16 %v3913_v42, %v3923_v47  ;;  %2806 = vmatpush.xpose.msk.msrb.mxu2 %vm787_vm10, %v3923_v47 }
 0xa3f   : > { %v1940_v49 = vsel %vm988_vm11, %v1932_v46, -inf }
 0xa40   : > { %1941 = vmax.xlane.f32.xlu1 %v1940_v49 }
 0xa45   : > { %v1720_v50 = vpop.permute.xlu0 %1719 }
 0xa46   : > { %2803 = vmatmul.msk.f32.vlgmr.msra.gmra.mxu3 %vm787_vm10, %v1720_v50 }
 0xa4d   : > { %v1724_v51 = vpop.permute.xlu0 %1723 }
 0xa4e   : > { %2807 = vmatmul.msk.f32.vlgmr.msrb.gmra.mxu2 %vm787_vm10, %v1724_v51 }
 0xa55   : > { %v3932_v52 = vpop.permute.xlu0 %1732 }
 0xa56   : > { %2800 = vmatpush.xpose.msk.msra.mxu0 %vm787_vm10, %v3932_v52 }
 0xa59   : > { %2801 = vmatmul.msk.f32.vlgmr.msra.gmra.mxu0 %vm787_vm10, %v1718_v53 }
 0xa5d   : > { %v1722_v54 = vpop.permute.xlu0 %1721 }
 0xa5e   : > { %2805 = vmatmul.msk.f32.vlgmr.msra.gmra.mxu1 %vm787_vm10, %v1722_v54 }
 0xab3   : > { %v1942_v4 = vpop.xlane.xlu1 %1941 }
 0xab4   : > { %v1809_v55 = vpop.f32.mrf.mxu1  ;;  %v1833_v56 = vpop.f32.mrf.mxu2  ;;  %v1964_v5 = vsub.f32 %v1932_v46, %v1942_v4 }
 0xab5   : > { %v1934_v57 = vmul.f32 0.5, %v1809_v55  ;;  %v1935_v58 = vmul.f32 0.5, %v1833_v56 }
 0xab6   : > { %v1972_v6 = vmul.f32 1.442695, %v1964_v5 }
 0xab7   : > { %v1946_v59 = vsel %vm988_vm11, %v1934_v57, -inf  ;;  %v1949_v60 = vsel %vm988_vm11, %v1935_v58, -inf }
 0xab8   : > { %1947 = vmax.xlane.f32.xlu0 %v1946_v59  ;;  %1950 = vmax.xlane.f32.xlu2 %v1949_v60  ;;  %3053 = vpow2.f32 %v1972_v6 }
 0xab9   : > { %v1785_v61 = vpop.f32.mrf.mxu3 }
 0xaba   : > { %v1933_v62 = vmul.f32 0.5, %v1785_v61 }
 0xabc   : > { %v1943_v63 = vsel %vm988_vm11, %v1933_v62, -inf }
 0xabd   : > { %1944 = vmax.xlane.f32.xlu1 %v1943_v63 }
 0xabe   : > { %v3943_v13 = vpop.eup %3053 }
 0xabf   : > { %v1988_v16 = vsel %vm988_vm11, %v3943_v13, 0.0 }
 0xac9   : > { %v1881_v0 = vpop.f32.mrf.mxu3 }
 0xaca   : > { %v1937_v1 = vmul.f32 0.5, %v1881_v0 }
 0xacc   : > { %v1955_v2 = vsel %vm988_vm11, %v1937_v1, -inf }
 0xacd   : > { %1956 = vmax.xlane.f32.xlu0 %v1955_v2 }
 0xad1   : > { %v1929_v15 = vpop.f32.mrf.mxu2 }
 0xad2   : > { %v1939_v18 = vmul.f32 0.5, %v1929_v15 }
 0xad4   : > { %v1961_v19 = vsel %vm988_vm11, %v1939_v18, -inf }
 0xad6   : > { %v1857_v7 = vpop.f32.mrf.mxu0 }
 0xad7   : > { %v1936_v8 = vmul.f32 0.5, %v1857_v7 }
 0xad9   : > { %v1952_v10 = vsel %vm988_vm11, %v1936_v8, -inf }
 0xada   : > { %1953 = vmax.xlane.f32.xlu1 %v1952_v10 }
 0xadb   : > { %v1905_v11 = vpop.f32.mrf.mxu1 }
 0xadc   : > { %v1938_v12 = vmul.f32 0.5, %v1905_v11 }
 0xade   : > { %v1958_v14 = vsel %vm988_vm11, %v1938_v12, -inf }
 0xadf   : > { %1959 = vmax.xlane.f32.xlu2 %v1958_v14 }
 0xae1   : > { %2985 = vrot.lane.b32.xlu0 %v2984_v41, %s4197_s29 }
 0xae2   : > { %1989 = vadd.xlane.f32.xlu1 %v1988_v16 }
 0xae7   : > { %1962 = vmax.xlane.f32.xlu2 %v1961_v19 }
 0xb2b   : > { %v1948_v20 = vpop.xlane.xlu0 %1947  ;;  %v1951_v21 = vpop.xlane.xlu2 %1950 }
 0xb2c   : > { %v1966_v22 = vsub.f32 %v1934_v57, %v1948_v20  ;;  %v1967_v24 = vsub.f32 %v1935_v58, %v1951_v21 }
 0xb2e   : > { %v1976_v23 = vmul.f32 1.442695, %v1966_v22  ;;  %v1978_v28 = vmul.f32 1.442695, %v1967_v24 }
 0xb30   : > { %3055 = vpow2.f32 %v1976_v23  ;;  %v1945_v26 = vpop.xlane.xlu1 %1944 }
 0xb31   : > { %v1965_v27 = vsub.f32 %v1933_v62, %v1945_v26 }
 0xb33   : > { %v1974_v29 = vmul.f32 1.442695, %v1965_v27 }
 0xb35   : > { %3057 = vpow2.f32 %v1974_v29 }
 0xb36   : > { %v3950_v9 = vpop.eup %3055  ;;  %3059 = vpow2.f32 %v1978_v28 }
 0xb37   : > { %v1994_v30 = vsel %vm988_vm11, %v3950_v9, 0.0 }
 0xb38   : > { %1995 = vadd.xlane.f32.xlu1 %v1994_v30  ;;  %v2819_v30 = vld [vmem:[%s4130_s8 + $0x2c] sm:$0xf] }
 0xb3b   : > { %v3058_v31 = vpop.eup %3057 }
 0xb3c   : > { %v3060_v32 = vpop.eup %3059  ;;  %v1991_v33 = vsel %vm988_vm11, %v3058_v31, 0.0 }
 0xb3d   : > { %1992 = vadd.xlane.f32.xlu0 %v1991_v33  ;;  %v1997_v34 = vsel %vm988_vm11, %v3060_v32, 0.0 }
 0xb40   : > { %v1957_v36 = vpop.xlane.xlu0 %1956  ;;  %1998 = vadd.xlane.f32.xlu1 %v1997_v34  ;;  %v2816_v34 = vld [vmem:[%s4130_s8 + $0x20] sm:$0xf] }
 0xb41   : > { %v1969_v17 = vsub.f32 %v1937_v1, %v1957_v36 }
 0xb43   : > { %v1982_v38 = vmul.f32 1.442695, %v1969_v17  ;;  %v2823_v17 = vld [vmem:[%s4130_s8 + $0x3c] sm:$0xf] }
 0xb45   : > { %3061 = vpow2.f32 %v1982_v38  ;;  %v2821_v38 = vld [vmem:[%s4130_s8 + $0x34] sm:$0xf] }
 0xb4b   : > { %v3956_v39 = vpop.eup %3061 }
 0xb4c   : > { %v2003_v40 = vsel %vm988_vm11, %v3956_v39, 0.0 }
 0xb4d   : > { %v1954_v41 = vpop.xlane.xlu1 %1953  ;;  %2004 = vadd.xlane.f32.xlu2 %v2003_v40  ;;  %v2822_v40 = vld [vmem:[%s4130_s8 + $0x38] sm:$0xf] }
 0xb4e   : > { %v1968_v44 = vsub.f32 %v1936_v8, %v1954_v41 }
 0xb50   : > { %v1980_v45 = vmul.f32 1.442695, %v1968_v44 }
 0xb51   : > { %2995 = vrot.lane.b32.xlu0 %v2994_v48, %s4197_s29 }
 0xb52   : > { %3063 = vpow2.f32 %v1980_v45  ;;  %v1960_v46 = vpop.xlane.xlu2 %1959 }
 0xb53   : > { %v1970_v49 = vsub.f32 %v1938_v12, %v1960_v46  ;;  %v2986_v50 = vpop.permute.xlu0 %2985 }
 0xb54   : > { %v2988_v51 = vunpack.i.h.bf16 %v2986_v50  ;;  %v2987_v53 = vunpack.i.l.bf16 %v2986_v50 }
 0xb55   : > { %v1984_v54 = vmul.f32 1.442695, %v1970_v49  ;;  %v1990_v61 = vpop.xlane.xlu1 %1989 }
 0xb56   : > { %2075 = vmatpush.msrb.mxu3 %v2987_v53  ;;  %2127 = vmatpush.msra.mxu2 %v2988_v51 }
 0xb57   : > { %3065 = vpow2.f32 %v1984_v54 }
 0xb58   : > { %v3964_v55 = vpop.eup %3063 }
 0xb59   : > { %2132 = vrot.lane.b32.xlu0 %v3932_v52, %s4197_s29  ;;  %v2000_v56 = vsel %vm988_vm11, %v3964_v55, 0.0  ;;  %v2989_v52 = vpack.i.bf16 %v3876_v35, %v3902_v37 }
 0xb5a   : > { %2001 = vadd.xlane.f32.xlu1 %v2000_v56  ;;  %v1963_v42 = vpop.xlane.xlu2 %1962 }
 0xb5b   : > { %v1971_v47 = vsub.f32 %v1939_v18, %v1963_v42 }
 0xb5d   : > { %v1986_v48 = vmul.f32 1.442695, %v1971_v47  ;;  %v3066_v57 = vpop.eup %3065 }
 0xb5e   : > { %v2006_v58 = vsel %vm988_vm11, %v3066_v57, 0.0 }
 0xb5f   : > { %3067 = vpow2.f32 %v1986_v48 }
 0xb62   : > { %2007 = vadd.xlane.f32.xlu1 %v2006_v58 }
 0xb65   : > { %v3068_v59 = vpop.eup %3067 }
 0xb66   : > { %v2009_v60 = vsel %vm988_vm11, %v3068_v59, 0.0 }
 0xb67   : > { %2010 = vadd.xlane.f32.xlu2 %v2009_v60 }
 0xb7b   : > { %2184 = vrot.lane.b32.xlu1 %v3915_v43, %s4197_s29 }
 0xb7f   : > { %2990 = vrot.lane.b32.xlu2 %v2989_v52, %s4197_s29 }
 0xbab   : > { %v1996_v62 = vpop.xlane.xlu1 %1995 }
 0xbb0   : > { %v1993_v63 = vpop.xlane.xlu0 %1992 }
 0xbb1   : > { %3069 = vrcp.f32 %v1993_v63 }
 0xbb3   : > { %v1999_v0 = vpop.xlane.xlu1 %1998 }
 0xbb4   : > { %3071 = vrcp.f32 %v1999_v0 }
 0xbb5   : > { %3073 = vrcp.f32 %v1996_v62 }
 0xbb6   : > { %3075 = vrcp.f32 %v1990_v61 }
 0xbb7   : > { %v3070_v1 = vpop.eup %3069 }
 0xbb8   : > { %v2021_v2 = vmul.f32 %v3070_v1, %v3058_v31  ;;  %v2818_v31 = vld [vmem:[%s4130_s8 + $0x28] sm:$0xf] }
 0xbba   : > { %v3072_v4 = vpop.eup %3071  ;;  %2809 = vmatmul.msk.f32.vlgmr.msrb.gmra.mxu3 %vm988_vm11, %v2021_v2 }
 0xbbb   : > { %v2023_v5 = vmul.f32 %v3072_v4, %v3060_v32  ;;  %v3074_v43 = vpop.eup %3073 }
 0xbbc   : > { %v2022_v7 = vmul.f32 %v3074_v43, %v3950_v9  ;;  %v3076_v12 = vpop.eup %3075 }
 0xbbd   : > { %2811 = vmatmul.msk.f32.vlgmr.msra.gmra.mxu2 %vm988_vm11, %v2023_v5  ;;  %v2020_v22 = vmul.f32 %v3076_v12, %v3943_v13  ;;  %v2817_v13 = vld [vmem:[%s4130_s8 + $0x24] sm:$0xf]  ;;  %v3008_v5 = vld [vmem:[%s4131_s9 + $0x1] ss:$0 sm:$0xff] }
 0xbc0   : > { %v2005_v8 = vpop.xlane.xlu2 %2004 }
 0xbc1   : > { %3077 = vrcp.f32 %v2005_v8 }
 0xbc3   : > { %v2996_v6 = vpop.permute.xlu0 %2995 }
 0xbc4   : > { %v2998_v35 = vunpack.i.h.bf16 %v2996_v6  ;;  %v2997_v37 = vunpack.i.l.bf16 %v2996_v6 }
 0xbc6   : > { %2101 = vmatpush.msrb.mxu1 %v2998_v35  ;;  %2231 = vmatpush.msrb.mxu2 %v2997_v37 }
 0xbc7   : > { %2810 = vmatmul.msk.f32.vlgmr.msrb.gmra.mxu1 %vm988_vm11, %v2022_v7  ;;  %v3078_v14 = vpop.eup %3077 }
 0xbc8   : > { %v2025_v23 = vmul.f32 %v3078_v14, %v3956_v39  ;;  %2830 = vmatpush.msk.msra.mxu2 %vm664_vm4, %v2819_v30  ;;  %v2820_v39 = vld [vmem:[%s4130_s8 + $0x30] sm:$0xf] }
 0xbcb   : > { %v2133_v24 = vpop.permute.xlu0 %2132 }
 0xbcd   : > { %v2002_v10 = vpop.xlane.xlu1 %2001 }
 0xbd5   : > { %v2008_v16 = vpop.xlane.xlu1 %2007 }
 0xbda   : > { %v2011_v11 = vpop.xlane.xlu2 %2010 }
 0xbdb   : > { %3079 = vrcp.f32 %v2011_v11 }
 0xbdc   : > { %3081 = vrcp.f32 %v2002_v10 }
 0xbdd   : > { %3083 = vrcp.f32 %v2008_v16  ;;  %v2512_v16 = vld [vmem:[#allocation11 + $0x30] sm:$0xff] }
 0xbe1   : > { %v3080_v15 = vpop.eup %3079 }
 0xbe2   : > { %v2027_v18 = vmul.f32 %v3080_v15, %v3068_v59  ;;  %v2991_v19 = vpop.permute.xlu2 %2990  ;;  %v3082_v26 = vpop.eup %3081  ;;  %v2513_v15 = vld [vmem:[#allocation11 + $0x38] sm:$0xff] }
 0xbe3   : > { %v2993_v20 = vunpack.i.h.bf16 %v2991_v19  ;;  %v2992_v21 = vunpack.i.l.bf16 %v2991_v19  ;;  %v3084_v27 = vpop.eup %3083  ;;  %v2024_v28 = vmul.f32 %v3082_v26, %v3964_v55  ;;  %v2510_v19 = vld [vmem:[#allocation11 + $0x20] sm:$0xff] }
 0xbe4   : > { %2815 = vmatmul.msk.f32.vlgmr.msrb.gmra.mxu2 %vm988_vm11, %v2027_v18  ;;  %v2026_v29 = vmul.f32 %v3084_v27, %v3066_v57  ;;  %v2511_v18 = vld [vmem:[#allocation11 + $0x28] sm:$0xff]  ;;  %v2846_v27 = vld [vmem:[%s4136_s14 + $0x58] sm:$0xff] }
 0xbe5   : > { %2049 = vmatpush.msrb.mxu0 %v2993_v20  ;;  %2179 = vmatpush.msra.mxu3 %v2992_v21  ;;  %v2849_v20 = vld [vmem:[%s4136_s14 + $0x70] sm:$0xff]  ;;  %v2848_v21 = vld [vmem:[%s4136_s14 + $0x68] sm:$0xff] }
 0xbe6   : > { %2808 = vmatmul.msk.f32.vlgmr.msrb.gmra.mxu0 %vm988_vm11, %v2020_v22  ;;  %2813 = vmatmul.msk.f32.vlgmr.msra.gmra.mxu3 %vm988_vm11, %v2025_v23 }
 0xbe7   : > { %2153 = vmatpush.msra.mxu0 %v2133_v24  ;;  %2826 = vmatpush.msk.msrb.mxu3 %vm664_vm4, %v2817_v13  ;;  %v2847_v24 = vld [vmem:[%s4136_s14 + $0x60] sm:$0xff] }
 0xbe8   : > { %2838 = vmatpush.msk.msrb.mxu2 %vm664_vm4, %v2823_v17 }
 0xbe9   : > { %2824 = vmatpush.msk.msrb.mxu0 %vm664_vm4, %v2816_v34  ;;  %2834 = vmatpush.msk.msra.mxu3 %vm664_vm4, %v2821_v38  ;;  %v3010_v34 = vld [vmem:[%s4187_s30 + $0x1] ss:$0 sm:$0xff]  ;;  %v2845_v38 = vld [vmem:[%s4136_s14 + $0x50] sm:$0xff] }
 0xbed   : > { %v2185_v9 = vpop.permute.xlu1 %2184 }
 0xbee   : > { %2812 = vmatmul.msk.f32.vlgmr.msra.gmra.mxu0 %vm988_vm11, %v2024_v28  ;;  %2205 = vmatpush.msra.mxu1 %v2185_v9 }
 0xbef   : > { %2814 = vmatmul.msk.f32.vlgmr.msra.gmra.mxu1 %vm988_vm11, %v2026_v29  ;;  %2832 = vmatpush.msk.msra.mxu0 %vm664_vm4, %v2820_v39  ;;  %v2844_v39 = vld [vmem:[%s4136_s14 + $0x48] sm:$0xff] }
 0xbf0   : > { %2828 = vmatpush.msk.msrb.mxu1 %vm664_vm4, %v2818_v31  ;;  %v3009_v31 = vld [vmem:[%s4186_s18 + $0x1] ss:$0 sm:$0xff] }
 0xbf2   : > { %2836 = vmatpush.msk.msra.mxu1 %vm664_vm4, %v2822_v40  ;;  %v2843_v40 = vld [vmem:[%s4136_s14 + $0x40] sm:$0xff] }
 0xc3d   : > { %v2077_v32 = vpop.f32.mrf.mxu3 }
 0xc3e   : > { %2827 = vmatmul.msk.f32.vlgmr.msrb.gmra.mxu3 %vm787_vm10, %v2077_v32 }
 0xc40   : > { %v2129_v33 = vpop.f32.mrf.mxu2 }
 0xc41   : > { %2831 = vmatmul.msk.f32.vlgmr.msra.gmra.mxu2 %vm787_vm10, %v2129_v33 }
 0xc44   : > { %v2103_v36 = vpop.f32.mrf.mxu1 }
 0xc45   : > { %2829 = vmatmul.msk.f32.vlgmr.msrb.gmra.mxu1 %vm787_vm10, %v2103_v36 }
 0xc63   : > { %v2051_v41 = vpop.f32.mrf.mxu0 }
 0xc64   : > { %2825 = vmatmul.msk.f32.vlgmr.msrb.gmra.mxu0 %vm787_vm10, %v2051_v41  ;;  %v3011_v41 = vld [vmem:[%s4188_s16 + $0x1] ss:$0 sm:$0xff] }
 0xc65   : > { %2543 = vmatpush.msrb.mxu0 %v2513_v15 }
 0xc67   : > { %v2233_v44 = vpop.f32.mrf.mxu2  ;;  %2544 = vmatpush.msrb.mxu0 %v2512_v16 }
 0xc68   : > { %2839 = vmatmul.msk.f32.vlgmr.msrb.gmra.mxu2 %vm787_vm10, %v2233_v44 }
 0xc69   : > { %v2181_v45 = vpop.f32.mrf.mxu3  ;;  %2545 = vmatpush.msrb.mxu0 %v2511_v18 }
 0xc6a   : > { %2835 = vmatmul.msk.f32.vlgmr.msra.gmra.mxu3 %vm787_vm10, %v2181_v45 }
 0xc6b   : > { %v2155_v46 = vpop.f32.mrf.mxu0  ;;  %2546 = vmatpush.msrb.mxu0 %v2510_v19 }
 0xc6c   : > { %v2207_v49 = vpop.f32.mrf.mxu1  ;;  %2833 = vmatmul.msk.f32.vlgmr.msra.gmra.mxu0 %vm787_vm10, %v2155_v46 }
 0xc6d   : > { %2837 = vmatmul.msk.f32.vlgmr.msra.gmra.mxu1 %vm787_vm10, %v2207_v49  ;;  %v3012_v49 = vld [vmem:[%s4189_s0 + $0x1] ss:$0 sm:$0xff] }
 0xcc1   : > { %v2294_v50 = vpop.f32.mrf.mxu3 }
 0xcc2   : > { %v2454_v53 = vsel %vm668_vm5, %v2294_v50, 0.0  ;;  %v2320_v55 = vpop.f32.mrf.mxu1 }
 0xcc3   : > { %v2456_v42 = vsel %vm668_vm5, %v2320_v55, 0.0 }
 0xcc4   : > { %v2346_v47 = vpop.f32.mrf.mxu2 }
 0xcc5   : > { %v2458_v58 = vsel %vm668_vm5, %v2346_v47, 0.0 }
 0xce1   : > { %v2268_v51 = vpop.f32.mrf.mxu0 }
 0xce2   : > { %v2453_v54 = vsel %vm668_vm5, %v2268_v51, 0.0 }
 0xce3   : > { %v2455_v56 = vadd.f32 %v2454_v53, %v2453_v54 }
 0xce5   : > { %v2457_v48 = vadd.f32 %v2456_v42, %v2455_v56 }
 0xce7   : > { %v2459_v60 = vadd.f32 %v2458_v58, %v2457_v48 }
 0xce9   : > { %v2372_v57 = vpop.f32.mrf.mxu0 }
 0xcea   : > { %v2460_v59 = vsel %vm668_vm5, %v2372_v57, 0.0  ;;  %v2424_v61 = vpop.f32.mrf.mxu1 }
 0xceb   : > { %v2461_v52 = vadd.f32 %v2460_v59, %v2459_v60  ;;  %v2450_v0 = vpop.f32.mrf.mxu2  ;;  %v2464_v2 = vsel %vm668_vm5, %v2424_v61, 0.0 }
 0xcec   : > { %v2466_v43 = vsel %vm668_vm5, %v2450_v0, 0.0 }
 0xced   : > { %v2398_v62 = vpop.f32.mrf.mxu3 }
 0xcee   : > { %v2462_v63 = vsel %vm668_vm5, %v2398_v62, 0.0 }
 0xcef   : > { %v2463_v1 = vadd.f32 %v2462_v63, %v2461_v52 }
 0xcf1   : > { %v2465_v4 = vadd.f32 %v2464_v2, %v2463_v1 }
 0xcf3   : > { %v2467_v6 = vadd.f32 %v2466_v43, %v2465_v4 }
 0xcf5   : > { %v2473_v35 = vadd.f32 %v3008_v5, %v2467_v6 }
 0xcf7   : > { %v2474_v37 = vadd.f32 %v2473_v35, %v3839_v3  ;;  %v2850_v3 = vld [vmem:[%s4136_s14 + $0x78] sm:$0xff] }
 0xcf8   : > { %2568 = vmatpush.msrb.mxu3 %v2850_v3 }
 0xcf9   : > { %v2479_v7 = vsel %vm668_vm5, %v2474_v37, 0.0 }
 0xcfa   : > { %2480 = vadd.xlane.f32.xlu2 %v2479_v7  ;;  %2569 = vmatpush.msrb.mxu3 %v2849_v20 }
 0xcfc   : > { %2570 = vmatpush.msrb.mxu3 %v2848_v21 }
 0xcfe   : > { %2571 = vmatpush.msrb.mxu3 %v2847_v24 }
 0xd00   : > { %2572 = vmatpush.msrb.mxu3 %v2846_v27 }
 0xd02   : > { %2573 = vmatpush.msrb.mxu3 %v2845_v38 }
 0xd04   : > { %2574 = vmatpush.msrb.mxu3 %v2844_v39 }
 0xd06   : > { %2575 = vmatpush.msrb.mxu3 %v2843_v40 }
 0xd6d   : > { %v2481_v8 = vpop.xlane.xlu2 %2480 }
 0xd6e   : > { %v2482_v10 = vmul.f32 %v2481_v8, %v3597_v25 }
 0xd70   : > { %v2483_v11 = vsub.f32 %v2474_v37, %v2482_v10 }
 0xd72   : > { %v2484_v12 = vmul.f32 %v2483_v11, %v2483_v11 }
 0xd74   : > { %v2485_v14 = vsel %vm668_vm5, %v2484_v12, 0.0 }
 0xd75   : > { %2486 = vadd.xlane.f32.xlu0 %v2485_v14 }
 0xde8   : > { %v2487_v22 = vpop.xlane.xlu0 %2486 }
 0xde9   : > { %v2488_v23 = vmul.f32 %v2487_v22, %v3597_v25 }
 0xdeb   : > { %v2489_v26 = vadd.f32 1e-05, %v2488_v23 }
 0xded   : > { %3085 = vrsqrt.f32 %v2489_v26  ;;  %vm2496_vm4 = vweird.f32 %v2489_v26 }
 0xdf3   : > { %v3086_v28 = vpop.eup %3085 }
 0xdf4   : > { %v2491_v29 = vmul.f32 %v3086_v28, %v2489_v26  ;;  %vm2497_vm3 = vweird.f32 %v3086_v28 }
 0xdf5   : > { %vm2498_vm6 = vmor %vm2496_vm4, %vm2497_vm3 }
 0xdf6   : > { %v2492_v9 = vmul.f32 %v3086_v28, %v2491_v29 }
 0xdf8   : > { %v2493_v13 = vmul.f32 0.5, %v2492_v9 }
 0xdfa   : > { %v2494_v30 = vsub.f32 1.5, %v2493_v13 }
 0xdfc   : > { %v2495_v25 = vmul.f32 %v3086_v28, %v2494_v30 }
 0xdfe   : > { %v2499_v32 = vsel %vm2498_vm6, %v3086_v28, %v2495_v25 }
 0xdff   : > { %v2500_v33 = vmul.f32 %v2499_v32, %v2483_v11 }
 0xe01   : > { %v2504_v36 = vmul.f32 %v3009_v31, %v2500_v33 }
 0xe03   : > { %v2508_v17 = vadd.f32 %v3010_v34, %v2504_v36 }
 0xe05   : > { %2852 = vmatmul.msk.f32.vlgmr.msrb.gmra.mxu0 %vm668_vm5, %v2508_v17 }
 0xe82   : > { %v2548_v44 = vpop.f32.mrf.mxu0 }
 0xe83   : > { %v2549_v45 = vadd.f32 %v3011_v41, %v2548_v44 }
 0xe85   : > { %v2551_v46 = vmax.f32 %v2549_v45, 0.0 }
 0xe87   : > { %2854 = vmatmul.msk.f32.vlgmr.msrb.gmra.mxu3 %vm1598_vm15, %v2551_v46 }
 0xf0a   : > { %v2577_v50 = vpop.f32.mrf.mxu3 }
 0xf0b   : > { %v2578_v51 = vadd.f32 %v3012_v49, %v2577_v50 }
 0xf0d   : > { %v2580_v53 = vadd.f32 %v2578_v51, %v2474_v37 }
 0xf0f   : > { %v2582_v54 = vrot.slane %v2580_v53, 1  ;;  %v2586_v55 = vrot.slane %v2580_v53, 2  ;;  %v2590_v56 = vrot.slane %v2580_v53, 3 }
 0xf11   : > { %2583 = vrot.lane.b32.xlu1 %v2582_v54, %s4198_s5  ;;  %s3281_s5 = sshra.s32 %s2613_s2, 4  ;;  %s3282_s5 = int_to_ptr.hbm [resolvable:$true] %s3281_s5 }
 0xf12   : > { %p3288_p12 = scmp.lt.s32.totalorder %s3282_s5, %s4200_s26 }
 0xf19   : > { %2587 = vrot.lane.b32.xlu1 %v2586_v55, %s4199_s19  ;;  %s3283_s19 = scalar_lea.hbm %s3282_s5, 1 }
 0xf1a   : > { %p3284_p1 = scmp.ne.s32.totalorder %s3282_s5, %s3283_s19  ;;  %p3289_p8 = scmp.lt.s32.totalorder %s3287_s11, %s3283_s19 }
 0xf1c   : > { %p3285_p3 = pnand %p3284_p1, %p3538_p13  ;;  %p3290_p7 = por %p3289_p8, %p3288_p12 }
 0xf1e   : > { %p3286_p5 = pneg %p3285_p3 }
 0xf20   : > { %p3291_p9 = pnand %p3290_p7, %p3286_p5 }
 0xf21   : > { %2591 = vrot.lane.b32.xlu1 %v2590_v56, %s4197_s29  ;;  %s2600_s29 = scalar_lea.sflag [#allocation4], %s3569_s15 }
 0xf83   : > { %v2584_v42 = vpop.permute.xlu1 %2583 }
 0xf84   : > { %v2594_v48 = vsel %vm668_vm5, %v2580_v53, %v2584_v42 }
 0xf8b   : > { %v2588_v47 = vpop.permute.xlu1 %2587 }
 0xf8c   : > { %v2595_v57 = vsel %vm1598_vm15, %v2594_v48, %v2588_v47 }
 0xf93   : > { %v2592_v58 = vpop.permute.xlu1 %2591 }
 0xf94   : > { %v2597_v59 = vsel %vm2596_vm7, %v2595_v57, %v2592_v58 }
 0xf95   : > { %2598 = vst [vmem:[%s612_s10 - $0x4] sm:$0x10] %v2597_v59 }
 0xf96   : > { %3294 = shalt.err (!%p3291_p9)
}
 0xf97   : > { %2879 = dma.vmem_to_hbm [thread:$0]  (%p3538_p13), %s2611_s25, 16, %s2613_s2, %s2600_s29  }
 0xf98 PF: > { %s2624_s15 = sand.u32 1, %s3333_s21   ;;  %p4201_p10 = scmp.ge.s32.totalorder %s3345_s24, 2 }
 0xf99   : > { %s2625_s10 = scalar_lea.sflag [#allocation4], %s2624_s15 }
 0xf9a   : > { %p2902_p11 = pnand %p4201_p10, %p3543_p4 }
 0xf9c   : > { %p2903_p0 = pneg %p2902_p11 }
 0xf9e   : > { %3328 = dma.done.wait (%p2903_p0), %s2625_s10, 16  }
 0xf9f   : > { %3330 = vsyncadd (%p2903_p0), %s2625_s10, 4294967280  ;;  %p32_p2 = scmp.ge.s32.totalorder %s3518_s17, 4   ;;  %s4202_s21 = smov %s3337_s22 }
 0xfa0   : > { %s4203_s22 = smov %s3341_s23  ;;  %s4204_s23 = smov %s3530_s1 }
 0xfa1   : > { %s4205_s24 = smov %s3518_s17  ;;  %34 = sbr.rel (!%p32_p2) target bundleno = 19 (0x13), region = 161 }
 0xfa6   :  { %2630 = vsyncpa [#allocation3], 1 }
 0xfa7   :  { %2632 = vsyncpa [#allocation3 + $0x1], 1 }
 0xfa8   :  { %2633 = vsyncpa [#allocation6], 1 }
 0xfa9   :  { %2634 = vsyncpa [#allocation9], 1 }
 0xfaa   :  { %2635 = vsyncpa [#allocation12], 1 }
 0xfab   :  { %2636 = vsyncpa [#allocation4], 1 }
 0xfac   :  { %2638 = vsyncpa [#allocation4 + $0x1], 1 }

</bundles_post_ra>
